<compile_context>
chip_gen: v7x
topology: tpu7x:2x2x1
jax: 0.10.0
libtpu: 0.0.40
codegen_flags: <defaults>
</compile_context>

<pallas_src>
import numpy as np
import jax
import jax.numpy as jnp
from jax import lax
from jax.experimental import pallas as pl
from jax.experimental.pallas import tpu as pltpu

# ----------------------------- small config ---------------------------------
VOCAB = 256
HIDDEN = 64
SEQ = 16
BATCH = 2
BS = BATCH * SEQ
NUM_HEADS = 2
HEAD_DIM = HIDDEN // NUM_HEADS
FFN = 128
MASK_TOKEN_ID = 103
LN_EPS = 1e-12

# ---- packed f32 vector block: LN gammas/betas, biases, b1, bdec, pos-emb ----
(_LNE_G, _LNE_B, _BQ, _BK, _BV, _BO, _LN1_G, _LN1_B,
 _B2, _LN2_G, _LN2_B, _BD, _LNM_G, _LNM_B) = range(14)
ROW_B1 = 14                      # lanes [0, FFN) of this row hold b1
ROW_BDEC = 15                    # lanes [0, VOCAB) hold the decoder bias
ROW_POS = 16                     # rows [16, 16+BS) hold the tiled pos-emb
NUM_VEC_ROWS = ROW_POS + BS      # 48  (multiple of 8 -> aligned slices)
VEC_LANES = VOCAB                # 256

# ---- packed bf16 weight slab (lane-concatenated, 128-aligned segment starts)
QKV_OFF = 0                      # (H, 3H)   lanes [0,   192)
WDEC_OFF = 256                   # (H, V)    lanes [256, 512)
W1_OFF = 512                     # (H, FFN)  lanes [512, 640)
WO_OFF = 640                     # (H, H)    lanes [640, 704)
WD_OFF = 768                     # (H, H)    lanes [768, 832)
LANES_A = 832


def _layernorm(x, gamma, beta):
    mu = jnp.mean(x, axis=-1, keepdims=True)
    var = jnp.mean(jnp.square(x - mu), axis=-1, keepdims=True)
    return (x - mu) * lax.rsqrt(var + LN_EPS) * gamma + beta


# ------------------------------ fused kernel ---------------------------------
def fused_bert_mlm_kernel(ids_ref, mask_ref, wlan_ref, wrow_ref, vec_ref, out_ref):
    def hrow(r):                                        # (1, HIDDEN) f32 row
        return vec_ref[r:r + 1, 0:HIDDEN]

    ids_flat = ids_ref[...]                             # (BS, 1) i32
    vocab_iota = lax.broadcasted_iota(jnp.int32, (BS, VOCAB), 1)   # hoisted

    # ---- embedding gather as one-hot MXU matmul (bf16) + pos + LN ----------
    onehot = (ids_flat == vocab_iota).astype(jnp.bfloat16)          # (BS, V)
    wemb = wrow_ref[0:VOCAB, :]                                     # bf16
    x = jnp.dot(onehot, wemb, preferred_element_type=jnp.float32)   # (BS, H)
    x = x + vec_ref[ROW_POS:ROW_POS + BS, 0:HIDDEN]
    x = _layernorm(x, hrow(_LNE_G), hrow(_LNE_B))

    # ---- fused QKV projection: one (BS,H) x (H,3H) bf16 matmul -------------
    wqkv = wlan_ref[:, QKV_OFF:QKV_OFF + 3 * HIDDEN]
    qkv = jnp.dot(x.astype(jnp.bfloat16), wqkv,
                  preferred_element_type=jnp.float32)
    q = qkv[:, 0:HIDDEN] + hrow(_BQ)
    k = qkv[:, HIDDEN:2 * HIDDEN] + hrow(_BK)
    v = qkv[:, 2 * HIDDEN:3 * HIDDEN] + hrow(_BV)

    mask = mask_ref[...]                                 # (B, S) f32
    scale = jnp.float32(1.0 / (HEAD_DIM ** 0.5))

    # ---- attention: per-(batch, head) contexts stay in vregs (no scratch) --
    ctx_rows = []
    for b in range(BATCH):                               # B = 2, static
        am = (1.0 - mask[b:b + 1, :]) * jnp.float32(-1e9)            # (1, S)
        r0, r1 = b * SEQ, (b + 1) * SEQ
        heads = []
        for h in range(NUM_HEADS):                       # 2, static
            c0, c1 = h * HEAD_DIM, (h + 1) * HEAD_DIM
            qh = q[r0:r1, c0:c1]                          # (S, HD) f32
            kh = k[r0:r1, c0:c1]
            vhd = v[r0:r1, c0:c1]
            # q @ k^T without materializing a transpose (contract last dims)
            s = lax.dot_general(qh, kh, (((1,), (1,)), ((), ())),
                                preferred_element_type=jnp.float32) * scale
            s = s + am
            s = s - jnp.max(s, axis=-1, keepdims=True)
            p = jnp.exp(s)
            p = p * pl.reciprocal(jnp.sum(p, axis=-1, keepdims=True), approx=True)
            heads.append(jnp.dot(p, vhd, preferred_element_type=jnp.float32))
        ctx_rows.append(jnp.concatenate(heads, axis=1))   # (S, H)
    ctx = jnp.concatenate(ctx_rows, axis=0)               # (BS, H)

    wo = wlan_ref[:, WO_OFF:WO_OFF + HIDDEN]
    attn = jnp.dot(ctx.astype(jnp.bfloat16), wo,
                   preferred_element_type=jnp.float32) + hrow(_BO)
    x1 = _layernorm(x + attn, hrow(_LN1_G), hrow(_LN1_B))

    # ---- FFN ----------------------------------------------------------------
    w1 = wlan_ref[:, W1_OFF:W1_OFF + FFN]
    f = jnp.dot(x1.astype(jnp.bfloat16), w1,
                preferred_element_type=jnp.float32) + vec_ref[ROW_B1:ROW_B1 + 1, 0:FFN]
    f = jax.nn.gelu(f, approximate=True)
    w2 = wrow_ref[VOCAB:VOCAB + FFN, :]
    f = jnp.dot(f.astype(jnp.bfloat16), w2,
                preferred_element_type=jnp.float32) + hrow(_B2)
    x2 = _layernorm(x1 + f, hrow(_LN2_G), hrow(_LN2_B))

    # ---- MLM head -----------------------------------------------------------
    wd = wlan_ref[:, WD_OFF:WD_OFF + HIDDEN]
    hh = jnp.dot(x2.astype(jnp.bfloat16), wd,
                 preferred_element_type=jnp.float32) + hrow(_BD)
    hh = jax.nn.gelu(hh, approximate=True)
    hh = _layernorm(hh, hrow(_LNM_G), hrow(_LNM_B))
    wdec = wlan_ref[:, WDEC_OFF:WDEC_OFF + VOCAB]
    logits = jnp.dot(hh.astype(jnp.bfloat16), wdec,
                     preferred_element_type=jnp.float32) \
        + vec_ref[ROW_BDEC:ROW_BDEC + 1, 0:VOCAB]          # (BS, V)

    # ---- argmax over vocab, first-max-index (torch.max semantics) ----------
    mx = jnp.max(logits, axis=-1, keepdims=True)
    pred = jnp.min(jnp.where(logits == mx, vocab_iota, VOCAB),
                   axis=-1, keepdims=True).astype(jnp.int32)         # (BS, 1)

    # ---- masked-token replacement (only batch row 0 is overwritten) --------
    ismask = (ids_flat == MASK_TOKEN_ID).astype(jnp.int32)           # (BS, 1)
    col_any = ismask[0:SEQ]
    for b in range(1, BATCH):
        col_any = col_any + ismask[b * SEQ:(b + 1) * SEQ]            # (S, 1)
    out_ref[0:SEQ, :] = jnp.where(col_any > 0, pred[0:SEQ],
                                  ids_flat[0:SEQ]).astype(jnp.int32)
    if BATCH > 1:
        out_ref[SEQ:BS, :] = ids_flat[SEQ:BS]


# ------------------------------ host wrapper ---------------------------------
@jax.jit
def bert4semire_mlm_forward(params, input_ids, attention_mask):
    ids_flat = input_ids.astype(jnp.int32).reshape(BS, 1)
    out_flat = pl.pallas_call(
        fused_bert_mlm_kernel,
        out_shape=jax.ShapeDtypeStruct((BS, 1), jnp.int32),
        in_specs=[pl.BlockSpec(memory_space=pltpu.MemorySpace.VMEM)] * 5,
        out_specs=pl.BlockSpec(memory_space=pltpu.MemorySpace.VMEM),
    )(ids_flat, attention_mask.astype(jnp.float32),
      params["w_lanes"], params["w_rows"], params["vecs"])
    return out_flat.reshape(BATCH, SEQ)


def init_params(key):
    ks = jax.random.split(key, 13)

    def w(k, shape):
        return 0.02 * jax.random.normal(k, shape, jnp.float32)

    wemb = w(ks[0], (VOCAB, HIDDEN))
    pos_emb = w(ks[1], (SEQ, HIDDEN))
    wq, wk, wv = w(ks[2], (HIDDEN, HIDDEN)), w(ks[3], (HIDDEN, HIDDEN)), w(ks[4], (HIDDEN, HIDDEN))
    wo = w(ks[5], (HIDDEN, HIDDEN))
    w1 = w(ks[6], (HIDDEN, FFN))
    w2 = w(ks[7], (FFN, HIDDEN))
    wd = w(ks[8], (HIDDEN, HIDDEN))
    wdec = w(ks[9], (HIDDEN, VOCAB))

    # bf16 lane-concatenated slab of all HIDDEN-row weight matrices
    slab = jnp.zeros((HIDDEN, LANES_A), jnp.float32)
    slab = slab.at[:, QKV_OFF:QKV_OFF + 3 * HIDDEN].set(
        jnp.concatenate([wq, wk, wv], axis=1))
    slab = slab.at[:, WDEC_OFF:WDEC_OFF + VOCAB].set(wdec)
    slab = slab.at[:, W1_OFF:W1_OFF + FFN].set(w1)
    slab = slab.at[:, WO_OFF:WO_OFF + HIDDEN].set(wo)
    slab = slab.at[:, WD_OFF:WD_OFF + HIDDEN].set(wd)
    w_lanes = slab.astype(jnp.bfloat16)

    # bf16 sublane-stacked slab: wemb (256,64) on top of w2 (128,64)
    w_rows = jnp.concatenate([wemb, w2], axis=0).astype(jnp.bfloat16)   # (384,64)

    # f32 vector pack: LN gammas/betas + H-sized biases + b1 + bdec + pos-emb
    vecs = jnp.zeros((NUM_VEC_ROWS, VEC_LANES), jnp.float32)
    for g in (_LNE_G, _LN1_G, _LN2_G, _LNM_G):
        vecs = vecs.at[g, 0:HIDDEN].set(1.0)
    bias_rows = (_BQ, _BK, _BV, _BO, _B2, _BD)
    bvals = 0.02 * jax.random.normal(ks[10], (len(bias_rows), HIDDEN), jnp.float32)
    for i, r in enumerate(bias_rows):
        vecs = vecs.at[r, 0:HIDDEN].set(bvals[i])
    vecs = vecs.at[ROW_B1, 0:FFN].set(
        0.02 * jax.random.normal(ks[11], (FFN,), jnp.float32))
    vecs = vecs.at[ROW_BDEC, 0:VOCAB].set(
        0.02 * jax.random.normal(ks[12], (VOCAB,), jnp.float32))
    vecs = vecs.at[ROW_POS:ROW_POS + BS, 0:HIDDEN].set(jnp.tile(pos_emb, (BATCH, 1)))

    return {"w_lanes": w_lanes, "w_rows": w_rows, "vecs": vecs}


if __name__ == "__main__":
    key = jax.random.PRNGKey(0)
    pkey, ikey = jax.random.split(key)
    params = init_params(pkey)

    input_ids = jax.random.randint(ikey, (BATCH, SEQ), 0, VOCAB, dtype=jnp.int32)
    # plant [MASK] (= 103) tokens like the module expects
    input_ids = input_ids.at[0, 3].set(MASK_TOKEN_ID)
    input_ids = input_ids.at[0, 7].set(MASK_TOKEN_ID)
    input_ids = input_ids.at[1, 5].set(MASK_TOKEN_ID)
    attention_mask = jnp.ones((BATCH, SEQ), jnp.float32)
    attention_mask = attention_mask.at[1, SEQ - 2:].set(0.0)

    out_ids = bert4semire_mlm_forward(params, input_ids, attention_mask)
    out_ids = jax.block_until_ready(out_ids)

    # sanity: only row 0 at (any-row) mask columns may differ; rest unchanged
    ids_np = np.asarray(input_ids)
    out_np = np.asarray(out_ids)
    col_mask = (ids_np == MASK_TOKEN_ID).any(axis=0)
    assert out_np.shape == (BATCH, SEQ) and out_np.dtype == np.int32
    assert np.array_equal(out_np[1:], ids_np[1:])
    assert np.array_equal(out_np[0, ~col_mask], ids_np[0, ~col_mask])
    assert np.all((out_np >= 0) & (out_np < VOCAB))

    print("KERNEL_OK")
</pallas_src>

<mosaic_0001>
module attributes {stable_mosaic.version = 11 : i64} {
  func.func @fused_bert_mlm_kernel(%arg0: memref<32x1xi32, #tpu.memory_space<vmem>>, %arg1: memref<2x16xf32, #tpu.memory_space<vmem>>, %arg2: memref<64x832xbf16, #tpu.memory_space<vmem>>, %arg3: memref<384x64xbf16, #tpu.memory_space<vmem>>, %arg4: memref<48x256xf32, #tpu.memory_space<vmem>>, %arg5: memref<32x1xi32, #tpu.memory_space<vmem>>) attributes {dimension_semantics = [], scalar_prefetch = 0 : i64, scratch_operands = 0 : i64, tpu.core_type = #tpu.core_type<tc>} {
    %c0 = arith.constant 0 : index
    %c0_0 = arith.constant 0 : index
    %0 = vector.load %arg0[%c0, %c0_0] : memref<32x1xi32, #tpu.memory_space<vmem>>, vector<32x1xi32>
    %1 = tpu.iota {dimensions = array<i32: 1>} : vector<32x256xi32>
    %2 = vector.broadcast %0 : vector<32x1xi32> to vector<32x256xi32>
    %3 = arith.cmpi eq, %2, %1 : vector<32x256xi32>
    %4 = arith.extui %3 : vector<32x256xi1> to vector<32x256xi32>
    %5 = arith.sitofp %4 : vector<32x256xi32> to vector<32x256xf32>
    %6 = arith.truncf %5 : vector<32x256xf32> to vector<32x256xbf16>
    %c0_1 = arith.constant 0 : index
    %c0_2 = arith.constant 0 : index
    %7 = vector.load %arg3[%c0_1, %c0_2] : memref<384x64xbf16, #tpu.memory_space<vmem>>, vector<256x64xbf16>
    %cst = arith.constant dense<0.000000e+00> : vector<32x64xf32>
    %8 = tpu.matmul %6, %7, %cst {dimension_numbers = #tpu.dot_dimension_numbers<[1], [0], [0], [1], [0, 0, 1, 1], [], []>} : vector<32x256xbf16>, vector<256x64xbf16>, vector<32x64xf32> -> vector<32x64xf32>
    %c16 = arith.constant 16 : index
    %c0_3 = arith.constant 0 : index
    %9 = vector.load %arg4[%c16, %c0_3] : memref<48x256xf32, #tpu.memory_space<vmem>>, vector<32x64xf32>
    %10 = arith.addf %8, %9 : vector<32x64xf32>
    %c0_4 = arith.constant 0 : index
    %c0_5 = arith.constant 0 : index
    %11 = vector.load %arg4[%c0_4, %c0_5] : memref<48x256xf32, #tpu.memory_space<vmem>>, vector<1x64xf32>
    %c1 = arith.constant 1 : index
    %c0_6 = arith.constant 0 : index
    %12 = vector.load %arg4[%c1, %c0_6] : memref<48x256xf32, #tpu.memory_space<vmem>>, vector<1x64xf32>
    %cst_7 = arith.constant dense<0.000000e+00> : vector<32xf32>
    %13 = vector.multi_reduction <add>, %10, %cst_7 [1] : vector<32x64xf32> to vector<32xf32>
    %14 = vector.shape_cast %13 : vector<32xf32> to vector<32x1xf32>
    %cst_8 = arith.constant 6.400000e+01 : f32
    %15 = vector.broadcast %cst_8 : f32 to vector<32x1xf32>
    %16 = arith.divf %14, %15 : vector<32x1xf32>
    %17 = vector.broadcast %16 : vector<32x1xf32> to vector<32x64xf32>
    %18 = arith.subf %10, %17 : vector<32x64xf32>
    %19 = arith.mulf %18, %18 : vector<32x64xf32>
    %cst_9 = arith.constant dense<0.000000e+00> : vector<32xf32>
    %20 = vector.multi_reduction <add>, %19, %cst_9 [1] : vector<32x64xf32> to vector<32xf32>
    %21 = vector.shape_cast %20 : vector<32xf32> to vector<32x1xf32>
    %cst_10 = arith.constant 6.400000e+01 : f32
    %22 = vector.broadcast %cst_10 : f32 to vector<32x1xf32>
    %23 = arith.divf %21, %22 : vector<32x1xf32>
    %24 = vector.broadcast %16 : vector<32x1xf32> to vector<32x64xf32>
    %25 = arith.subf %10, %24 : vector<32x64xf32>
    %cst_11 = arith.constant 9.99999996E-13 : f32
    %26 = vector.broadcast %cst_11 : f32 to vector<32x1xf32>
    %27 = arith.addf %23, %26 : vector<32x1xf32>
    %28 = math.rsqrt %27 : vector<32x1xf32>
    %29 = vector.broadcast %28 : vector<32x1xf32> to vector<32x64xf32>
    %30 = arith.mulf %25, %29 : vector<32x64xf32>
    %31 = vector.broadcast %11 : vector<1x64xf32> to vector<32x64xf32>
    %32 = arith.mulf %30, %31 : vector<32x64xf32>
    %33 = vector.broadcast %12 : vector<1x64xf32> to vector<32x64xf32>
    %34 = arith.addf %32, %33 : vector<32x64xf32>
    %c0_12 = arith.constant 0 : index
    %c0_13 = arith.constant 0 : index
    %35 = vector.load %arg2[%c0_12, %c0_13] : memref<64x832xbf16, #tpu.memory_space<vmem>>, vector<64x192xbf16>
    %36 = arith.truncf %34 : vector<32x64xf32> to vector<32x64xbf16>
    %cst_14 = arith.constant dense<0.000000e+00> : vector<32x192xf32>
    %37 = tpu.matmul %36, %35, %cst_14 {dimension_numbers = #tpu.dot_dimension_numbers<[1], [0], [0], [1], [0, 0, 1, 1], [], []>} : vector<32x64xbf16>, vector<64x192xbf16>, vector<32x192xf32> -> vector<32x192xf32>
    %38 = vector.extract_strided_slice %37 {offsets = [0, 0], sizes = [32, 64], strides = [1, 1]} : vector<32x192xf32> to vector<32x64xf32>
    %c2 = arith.constant 2 : index
    %c0_15 = arith.constant 0 : index
    %39 = vector.load %arg4[%c2, %c0_15] : memref<48x256xf32, #tpu.memory_space<vmem>>, vector<1x64xf32>
    %40 = vector.broadcast %39 : vector<1x64xf32> to vector<32x64xf32>
    %41 = arith.addf %38, %40 : vector<32x64xf32>
    %42 = vector.extract_strided_slice %37 {offsets = [0, 64], sizes = [32, 64], strides = [1, 1]} : vector<32x192xf32> to vector<32x64xf32>
    %c3 = arith.constant 3 : index
    %c0_16 = arith.constant 0 : index
    %43 = vector.load %arg4[%c3, %c0_16] : memref<48x256xf32, #tpu.memory_space<vmem>>, vector<1x64xf32>
    %44 = vector.broadcast %43 : vector<1x64xf32> to vector<32x64xf32>
    %45 = arith.addf %42, %44 : vector<32x64xf32>
    %46 = vector.extract_strided_slice %37 {offsets = [0, 128], sizes = [32, 64], strides = [1, 1]} : vector<32x192xf32> to vector<32x64xf32>
    %c4 = arith.constant 4 : index
    %c0_17 = arith.constant 0 : index
    %47 = vector.load %arg4[%c4, %c0_17] : memref<48x256xf32, #tpu.memory_space<vmem>>, vector<1x64xf32>
    %48 = vector.broadcast %47 : vector<1x64xf32> to vector<32x64xf32>
    %49 = arith.addf %46, %48 : vector<32x64xf32>
    %c0_18 = arith.constant 0 : index
    %c0_19 = arith.constant 0 : index
    %50 = vector.load %arg1[%c0_18, %c0_19] : memref<2x16xf32, #tpu.memory_space<vmem>>, vector<2x16xf32>
    %51 = vector.extract_strided_slice %50 {offsets = [0, 0], sizes = [1, 16], strides = [1, 1]} : vector<2x16xf32> to vector<1x16xf32>
    %cst_20 = arith.constant 1.000000e+00 : f32
    %52 = vector.broadcast %cst_20 : f32 to vector<1x16xf32>
    %53 = arith.subf %52, %51 : vector<1x16xf32>
    %cst_21 = arith.constant -1.000000e+09 : f32
    %54 = vector.broadcast %cst_21 : f32 to vector<1x16xf32>
    %55 = arith.mulf %53, %54 : vector<1x16xf32>
    %56 = vector.extract_strided_slice %41 {offsets = [0, 0], sizes = [16, 32], strides = [1, 1]} : vector<32x64xf32> to vector<16x32xf32>
    %57 = vector.extract_strided_slice %45 {offsets = [0, 0], sizes = [16, 32], strides = [1, 1]} : vector<32x64xf32> to vector<16x32xf32>
    %58 = vector.extract_strided_slice %49 {offsets = [0, 0], sizes = [16, 32], strides = [1, 1]} : vector<32x64xf32> to vector<16x32xf32>
    %cst_22 = arith.constant dense<0.000000e+00> : vector<16x16xf32>
    %59 = tpu.matmul %56, %57, %cst_22 {dimension_numbers = #tpu.dot_dimension_numbers<[1], [1], [0], [0], [0, 0, 1, 0], [], []>} : vector<16x32xf32>, vector<16x32xf32>, vector<16x16xf32> -> vector<16x16xf32>
    %cst_23 = arith.constant 0.176776692 : f32
    %60 = vector.broadcast %cst_23 : f32 to vector<16x16xf32>
    %61 = arith.mulf %59, %60 : vector<16x16xf32>
    %62 = vector.broadcast %55 : vector<1x16xf32> to vector<16x16xf32>
    %63 = arith.addf %61, %62 : vector<16x16xf32>
    %cst_24 = arith.constant dense<0xFF800000> : vector<16xf32>
    %64 = vector.multi_reduction <maximumf>, %63, %cst_24 [1] : vector<16x16xf32> to vector<16xf32>
    %65 = vector.shape_cast %64 : vector<16xf32> to vector<16x1xf32>
    %66 = vector.broadcast %65 : vector<16x1xf32> to vector<16x16xf32>
    %67 = arith.subf %63, %66 : vector<16x16xf32>
    %68 = math.exp %67 : vector<16x16xf32>
    %cst_25 = arith.constant dense<0.000000e+00> : vector<16xf32>
    %69 = vector.multi_reduction <add>, %68, %cst_25 [1] : vector<16x16xf32> to vector<16xf32>
    %70 = vector.shape_cast %69 : vector<16xf32> to vector<16x1xf32>
    %71 = tpu.reciprocal %70 {approx = true} : vector<16x1xf32> -> vector<16x1xf32>
    %72 = vector.broadcast %71 : vector<16x1xf32> to vector<16x16xf32>
    %73 = arith.mulf %68, %72 : vector<16x16xf32>
    %cst_26 = arith.constant dense<0.000000e+00> : vector<16x32xf32>
    %74 = tpu.matmul %73, %58, %cst_26 {dimension_numbers = #tpu.dot_dimension_numbers<[1], [0], [0], [1], [0, 0, 1, 1], [], []>} : vector<16x16xf32>, vector<16x32xf32>, vector<16x32xf32> -> vector<16x32xf32>
    %75 = vector.extract_strided_slice %41 {offsets = [0, 32], sizes = [16, 32], strides = [1, 1]} : vector<32x64xf32> to vector<16x32xf32>
    %76 = vector.extract_strided_slice %45 {offsets = [0, 32], sizes = [16, 32], strides = [1, 1]} : vector<32x64xf32> to vector<16x32xf32>
    %77 = vector.extract_strided_slice %49 {offsets = [0, 32], sizes = [16, 32], strides = [1, 1]} : vector<32x64xf32> to vector<16x32xf32>
    %cst_27 = arith.constant dense<0.000000e+00> : vector<16x16xf32>
    %78 = tpu.matmul %75, %76, %cst_27 {dimension_numbers = #tpu.dot_dimension_numbers<[1], [1], [0], [0], [0, 0, 1, 0], [], []>} : vector<16x32xf32>, vector<16x32xf32>, vector<16x16xf32> -> vector<16x16xf32>
    %cst_28 = arith.constant 0.176776692 : f32
    %79 = vector.broadcast %cst_28 : f32 to vector<16x16xf32>
    %80 = arith.mulf %78, %79 : vector<16x16xf32>
    %81 = vector.broadcast %55 : vector<1x16xf32> to vector<16x16xf32>
    %82 = arith.addf %80, %81 : vector<16x16xf32>
    %cst_29 = arith.constant dense<0xFF800000> : vector<16xf32>
    %83 = vector.multi_reduction <maximumf>, %82, %cst_29 [1] : vector<16x16xf32> to vector<16xf32>
    %84 = vector.shape_cast %83 : vector<16xf32> to vector<16x1xf32>
    %85 = vector.broadcast %84 : vector<16x1xf32> to vector<16x16xf32>
    %86 = arith.subf %82, %85 : vector<16x16xf32>
    %87 = math.exp %86 : vector<16x16xf32>
    %cst_30 = arith.constant dense<0.000000e+00> : vector<16xf32>
    %88 = vector.multi_reduction <add>, %87, %cst_30 [1] : vector<16x16xf32> to vector<16xf32>
    %89 = vector.shape_cast %88 : vector<16xf32> to vector<16x1xf32>
    %90 = tpu.reciprocal %89 {approx = true} : vector<16x1xf32> -> vector<16x1xf32>
    %91 = vector.broadcast %90 : vector<16x1xf32> to vector<16x16xf32>
    %92 = arith.mulf %87, %91 : vector<16x16xf32>
    %cst_31 = arith.constant dense<0.000000e+00> : vector<16x32xf32>
    %93 = tpu.matmul %92, %77, %cst_31 {dimension_numbers = #tpu.dot_dimension_numbers<[1], [0], [0], [1], [0, 0, 1, 1], [], []>} : vector<16x16xf32>, vector<16x32xf32>, vector<16x32xf32> -> vector<16x32xf32>
    %94 = tpu.concatenate %74, %93 in 1 : vector<16x32xf32>, vector<16x32xf32> -> vector<16x64xf32>
    %95 = vector.extract_strided_slice %50 {offsets = [1, 0], sizes = [1, 16], strides = [1, 1]} : vector<2x16xf32> to vector<1x16xf32>
    %cst_32 = arith.constant 1.000000e+00 : f32
    %96 = vector.broadcast %cst_32 : f32 to vector<1x16xf32>
    %97 = arith.subf %96, %95 : vector<1x16xf32>
    %cst_33 = arith.constant -1.000000e+09 : f32
    %98 = vector.broadcast %cst_33 : f32 to vector<1x16xf32>
    %99 = arith.mulf %97, %98 : vector<1x16xf32>
    %100 = vector.extract_strided_slice %41 {offsets = [16, 0], sizes = [16, 32], strides = [1, 1]} : vector<32x64xf32> to vector<16x32xf32>
    %101 = vector.extract_strided_slice %45 {offsets = [16, 0], sizes = [16, 32], strides = [1, 1]} : vector<32x64xf32> to vector<16x32xf32>
    %102 = vector.extract_strided_slice %49 {offsets = [16, 0], sizes = [16, 32], strides = [1, 1]} : vector<32x64xf32> to vector<16x32xf32>
    %cst_34 = arith.constant dense<0.000000e+00> : vector<16x16xf32>
    %103 = tpu.matmul %100, %101, %cst_34 {dimension_numbers = #tpu.dot_dimension_numbers<[1], [1], [0], [0], [0, 0, 1, 0], [], []>} : vector<16x32xf32>, vector<16x32xf32>, vector<16x16xf32> -> vector<16x16xf32>
    %cst_35 = arith.constant 0.176776692 : f32
    %104 = vector.broadcast %cst_35 : f32 to vector<16x16xf32>
    %105 = arith.mulf %103, %104 : vector<16x16xf32>
    %106 = vector.broadcast %99 : vector<1x16xf32> to vector<16x16xf32>
    %107 = arith.addf %105, %106 : vector<16x16xf32>
    %cst_36 = arith.constant dense<0xFF800000> : vector<16xf32>
    %108 = vector.multi_reduction <maximumf>, %107, %cst_36 [1] : vector<16x16xf32> to vector<16xf32>
    %109 = vector.shape_cast %108 : vector<16xf32> to vector<16x1xf32>
    %110 = vector.broadcast %109 : vector<16x1xf32> to vector<16x16xf32>
    %111 = arith.subf %107, %110 : vector<16x16xf32>
    %112 = math.exp %111 : vector<16x16xf32>
    %cst_37 = arith.constant dense<0.000000e+00> : vector<16xf32>
    %113 = vector.multi_reduction <add>, %112, %cst_37 [1] : vector<16x16xf32> to vector<16xf32>
    %114 = vector.shape_cast %113 : vector<16xf32> to vector<16x1xf32>
    %115 = tpu.reciprocal %114 {approx = true} : vector<16x1xf32> -> vector<16x1xf32>
    %116 = vector.broadcast %115 : vector<16x1xf32> to vector<16x16xf32>
    %117 = arith.mulf %112, %116 : vector<16x16xf32>
    %cst_38 = arith.constant dense<0.000000e+00> : vector<16x32xf32>
    %118 = tpu.matmul %117, %102, %cst_38 {dimension_numbers = #tpu.dot_dimension_numbers<[1], [0], [0], [1], [0, 0, 1, 1], [], []>} : vector<16x16xf32>, vector<16x32xf32>, vector<16x32xf32> -> vector<16x32xf32>
    %119 = vector.extract_strided_slice %41 {offsets = [16, 32], sizes = [16, 32], strides = [1, 1]} : vector<32x64xf32> to vector<16x32xf32>
    %120 = vector.extract_strided_slice %45 {offsets = [16, 32], sizes = [16, 32], strides = [1, 1]} : vector<32x64xf32> to vector<16x32xf32>
    %121 = vector.extract_strided_slice %49 {offsets = [16, 32], sizes = [16, 32], strides = [1, 1]} : vector<32x64xf32> to vector<16x32xf32>
    %cst_39 = arith.constant dense<0.000000e+00> : vector<16x16xf32>
    %122 = tpu.matmul %119, %120, %cst_39 {dimension_numbers = #tpu.dot_dimension_numbers<[1], [1], [0], [0], [0, 0, 1, 0], [], []>} : vector<16x32xf32>, vector<16x32xf32>, vector<16x16xf32> -> vector<16x16xf32>
    %cst_40 = arith.constant 0.176776692 : f32
    %123 = vector.broadcast %cst_40 : f32 to vector<16x16xf32>
    %124 = arith.mulf %122, %123 : vector<16x16xf32>
    %125 = vector.broadcast %99 : vector<1x16xf32> to vector<16x16xf32>
    %126 = arith.addf %124, %125 : vector<16x16xf32>
    %cst_41 = arith.constant dense<0xFF800000> : vector<16xf32>
    %127 = vector.multi_reduction <maximumf>, %126, %cst_41 [1] : vector<16x16xf32> to vector<16xf32>
    %128 = vector.shape_cast %127 : vector<16xf32> to vector<16x1xf32>
    %129 = vector.broadcast %128 : vector<16x1xf32> to vector<16x16xf32>
    %130 = arith.subf %126, %129 : vector<16x16xf32>
    %131 = math.exp %130 : vector<16x16xf32>
    %cst_42 = arith.constant dense<0.000000e+00> : vector<16xf32>
    %132 = vector.multi_reduction <add>, %131, %cst_42 [1] : vector<16x16xf32> to vector<16xf32>
    %133 = vector.shape_cast %132 : vector<16xf32> to vector<16x1xf32>
    %134 = tpu.reciprocal %133 {approx = true} : vector<16x1xf32> -> vector<16x1xf32>
    %135 = vector.broadcast %134 : vector<16x1xf32> to vector<16x16xf32>
    %136 = arith.mulf %131, %135 : vector<16x16xf32>
    %cst_43 = arith.constant dense<0.000000e+00> : vector<16x32xf32>
    %137 = tpu.matmul %136, %121, %cst_43 {dimension_numbers = #tpu.dot_dimension_numbers<[1], [0], [0], [1], [0, 0, 1, 1], [], []>} : vector<16x16xf32>, vector<16x32xf32>, vector<16x32xf32> -> vector<16x32xf32>
    %138 = tpu.concatenate %118, %137 in 1 : vector<16x32xf32>, vector<16x32xf32> -> vector<16x64xf32>
    %139 = tpu.concatenate %94, %138 in 0 : vector<16x64xf32>, vector<16x64xf32> -> vector<32x64xf32>
    %c0_44 = arith.constant 0 : index
    %c640 = arith.constant 640 : index
    %140 = vector.load %arg2[%c0_44, %c640] : memref<64x832xbf16, #tpu.memory_space<vmem>>, vector<64x64xbf16>
    %141 = arith.truncf %139 : vector<32x64xf32> to vector<32x64xbf16>
    %cst_45 = arith.constant dense<0.000000e+00> : vector<32x64xf32>
    %142 = tpu.matmul %141, %140, %cst_45 {dimension_numbers = #tpu.dot_dimension_numbers<[1], [0], [0], [1], [0, 0, 1, 1], [], []>} : vector<32x64xbf16>, vector<64x64xbf16>, vector<32x64xf32> -> vector<32x64xf32>
    %c5 = arith.constant 5 : index
    %c0_46 = arith.constant 0 : index
    %143 = vector.load %arg4[%c5, %c0_46] : memref<48x256xf32, #tpu.memory_space<vmem>>, vector<1x64xf32>
    %144 = vector.broadcast %143 : vector<1x64xf32> to vector<32x64xf32>
    %145 = arith.addf %142, %144 : vector<32x64xf32>
    %146 = arith.addf %34, %145 : vector<32x64xf32>
    %c6 = arith.constant 6 : index
    %c0_47 = arith.constant 0 : index
    %147 = vector.load %arg4[%c6, %c0_47] : memref<48x256xf32, #tpu.memory_space<vmem>>, vector<1x64xf32>
    %c7 = arith.constant 7 : index
    %c0_48 = arith.constant 0 : index
    %148 = vector.load %arg4[%c7, %c0_48] : memref<48x256xf32, #tpu.memory_space<vmem>>, vector<1x64xf32>
    %cst_49 = arith.constant dense<0.000000e+00> : vector<32xf32>
    %149 = vector.multi_reduction <add>, %146, %cst_49 [1] : vector<32x64xf32> to vector<32xf32>
    %150 = vector.shape_cast %149 : vector<32xf32> to vector<32x1xf32>
    %cst_50 = arith.constant 6.400000e+01 : f32
    %151 = vector.broadcast %cst_50 : f32 to vector<32x1xf32>
    %152 = arith.divf %150, %151 : vector<32x1xf32>
    %153 = vector.broadcast %152 : vector<32x1xf32> to vector<32x64xf32>
    %154 = arith.subf %146, %153 : vector<32x64xf32>
    %155 = arith.mulf %154, %154 : vector<32x64xf32>
    %cst_51 = arith.constant dense<0.000000e+00> : vector<32xf32>
    %156 = vector.multi_reduction <add>, %155, %cst_51 [1] : vector<32x64xf32> to vector<32xf32>
    %157 = vector.shape_cast %156 : vector<32xf32> to vector<32x1xf32>
    %cst_52 = arith.constant 6.400000e+01 : f32
    %158 = vector.broadcast %cst_52 : f32 to vector<32x1xf32>
    %159 = arith.divf %157, %158 : vector<32x1xf32>
    %160 = vector.broadcast %152 : vector<32x1xf32> to vector<32x64xf32>
    %161 = arith.subf %146, %160 : vector<32x64xf32>
    %cst_53 = arith.constant 9.99999996E-13 : f32
    %162 = vector.broadcast %cst_53 : f32 to vector<32x1xf32>
    %163 = arith.addf %159, %162 : vector<32x1xf32>
    %164 = math.rsqrt %163 : vector<32x1xf32>
    %165 = vector.broadcast %164 : vector<32x1xf32> to vector<32x64xf32>
    %166 = arith.mulf %161, %165 : vector<32x64xf32>
    %167 = vector.broadcast %147 : vector<1x64xf32> to vector<32x64xf32>
    %168 = arith.mulf %166, %167 : vector<32x64xf32>
    %169 = vector.broadcast %148 : vector<1x64xf32> to vector<32x64xf32>
    %170 = arith.addf %168, %169 : vector<32x64xf32>
    %c0_54 = arith.constant 0 : index
    %c512 = arith.constant 512 : index
    %171 = vector.load %arg2[%c0_54, %c512] : memref<64x832xbf16, #tpu.memory_space<vmem>>, vector<64x128xbf16>
    %172 = arith.truncf %170 : vector<32x64xf32> to vector<32x64xbf16>
    %cst_55 = arith.constant dense<0.000000e+00> : vector<32x128xf32>
    %173 = tpu.matmul %172, %171, %cst_55 {dimension_numbers = #tpu.dot_dimension_numbers<[1], [0], [0], [1], [0, 0, 1, 1], [], []>} : vector<32x64xbf16>, vector<64x128xbf16>, vector<32x128xf32> -> vector<32x128xf32>
    %c14 = arith.constant 14 : index
    %c0_56 = arith.constant 0 : index
    %174 = vector.load %arg4[%c14, %c0_56] : memref<48x256xf32, #tpu.memory_space<vmem>>, vector<1x128xf32>
    %175 = vector.broadcast %174 : vector<1x128xf32> to vector<32x128xf32>
    %176 = arith.addf %173, %175 : vector<32x128xf32>
    %177 = arith.mulf %176, %176 : vector<32x128xf32>
    %178 = arith.mulf %176, %177 : vector<32x128xf32>
    %cst_57 = arith.constant 4.471500e-02 : f32
    %179 = vector.broadcast %cst_57 : f32 to vector<32x128xf32>
    %180 = arith.mulf %179, %178 : vector<32x128xf32>
    %181 = arith.addf %176, %180 : vector<32x128xf32>
    %cst_58 = arith.constant 0.797884583 : f32
    %182 = vector.broadcast %cst_58 : f32 to vector<32x128xf32>
    %183 = arith.mulf %182, %181 : vector<32x128xf32>
    %184 = math.tanh %183 : vector<32x128xf32>
    %cst_59 = arith.constant 1.000000e+00 : f32
    %185 = vector.broadcast %cst_59 : f32 to vector<32x128xf32>
    %186 = arith.addf %185, %184 : vector<32x128xf32>
    %cst_60 = arith.constant 5.000000e-01 : f32
    %187 = vector.broadcast %cst_60 : f32 to vector<32x128xf32>
    %188 = arith.mulf %187, %186 : vector<32x128xf32>
    %189 = arith.mulf %176, %188 : vector<32x128xf32>
    %c256 = arith.constant 256 : index
    %c0_61 = arith.constant 0 : index
    %190 = vector.load %arg3[%c256, %c0_61] : memref<384x64xbf16, #tpu.memory_space<vmem>>, vector<128x64xbf16>
    %191 = arith.truncf %189 : vector<32x128xf32> to vector<32x128xbf16>
    %cst_62 = arith.constant dense<0.000000e+00> : vector<32x64xf32>
    %192 = tpu.matmul %191, %190, %cst_62 {dimension_numbers = #tpu.dot_dimension_numbers<[1], [0], [0], [1], [0, 0, 1, 1], [], []>} : vector<32x128xbf16>, vector<128x64xbf16>, vector<32x64xf32> -> vector<32x64xf32>
    %c8 = arith.constant 8 : index
    %c0_63 = arith.constant 0 : index
    %193 = vector.load %arg4[%c8, %c0_63] : memref<48x256xf32, #tpu.memory_space<vmem>>, vector<1x64xf32>
    %194 = vector.broadcast %193 : vector<1x64xf32> to vector<32x64xf32>
    %195 = arith.addf %192, %194 : vector<32x64xf32>
    %196 = arith.addf %170, %195 : vector<32x64xf32>
    %c9 = arith.constant 9 : index
    %c0_64 = arith.constant 0 : index
    %197 = vector.load %arg4[%c9, %c0_64] : memref<48x256xf32, #tpu.memory_space<vmem>>, vector<1x64xf32>
    %c10 = arith.constant 10 : index
    %c0_65 = arith.constant 0 : index
    %198 = vector.load %arg4[%c10, %c0_65] : memref<48x256xf32, #tpu.memory_space<vmem>>, vector<1x64xf32>
    %cst_66 = arith.constant dense<0.000000e+00> : vector<32xf32>
    %199 = vector.multi_reduction <add>, %196, %cst_66 [1] : vector<32x64xf32> to vector<32xf32>
    %200 = vector.shape_cast %199 : vector<32xf32> to vector<32x1xf32>
    %cst_67 = arith.constant 6.400000e+01 : f32
    %201 = vector.broadcast %cst_67 : f32 to vector<32x1xf32>
    %202 = arith.divf %200, %201 : vector<32x1xf32>
    %203 = vector.broadcast %202 : vector<32x1xf32> to vector<32x64xf32>
    %204 = arith.subf %196, %203 : vector<32x64xf32>
    %205 = arith.mulf %204, %204 : vector<32x64xf32>
    %cst_68 = arith.constant dense<0.000000e+00> : vector<32xf32>
    %206 = vector.multi_reduction <add>, %205, %cst_68 [1] : vector<32x64xf32> to vector<32xf32>
    %207 = vector.shape_cast %206 : vector<32xf32> to vector<32x1xf32>
    %cst_69 = arith.constant 6.400000e+01 : f32
    %208 = vector.broadcast %cst_69 : f32 to vector<32x1xf32>
    %209 = arith.divf %207, %208 : vector<32x1xf32>
    %210 = vector.broadcast %202 : vector<32x1xf32> to vector<32x64xf32>
    %211 = arith.subf %196, %210 : vector<32x64xf32>
    %cst_70 = arith.constant 9.99999996E-13 : f32
    %212 = vector.broadcast %cst_70 : f32 to vector<32x1xf32>
    %213 = arith.addf %209, %212 : vector<32x1xf32>
    %214 = math.rsqrt %213 : vector<32x1xf32>
    %215 = vector.broadcast %214 : vector<32x1xf32> to vector<32x64xf32>
    %216 = arith.mulf %211, %215 : vector<32x64xf32>
    %217 = vector.broadcast %197 : vector<1x64xf32> to vector<32x64xf32>
    %218 = arith.mulf %216, %217 : vector<32x64xf32>
    %219 = vector.broadcast %198 : vector<1x64xf32> to vector<32x64xf32>
    %220 = arith.addf %218, %219 : vector<32x64xf32>
    %c0_71 = arith.constant 0 : index
    %c768 = arith.constant 768 : index
    %221 = vector.load %arg2[%c0_71, %c768] : memref<64x832xbf16, #tpu.memory_space<vmem>>, vector<64x64xbf16>
    %222 = arith.truncf %220 : vector<32x64xf32> to vector<32x64xbf16>
    %cst_72 = arith.constant dense<0.000000e+00> : vector<32x64xf32>
    %223 = tpu.matmul %222, %221, %cst_72 {dimension_numbers = #tpu.dot_dimension_numbers<[1], [0], [0], [1], [0, 0, 1, 1], [], []>} : vector<32x64xbf16>, vector<64x64xbf16>, vector<32x64xf32> -> vector<32x64xf32>
    %c11 = arith.constant 11 : index
    %c0_73 = arith.constant 0 : index
    %224 = vector.load %arg4[%c11, %c0_73] : memref<48x256xf32, #tpu.memory_space<vmem>>, vector<1x64xf32>
    %225 = vector.broadcast %224 : vector<1x64xf32> to vector<32x64xf32>
    %226 = arith.addf %223, %225 : vector<32x64xf32>
    %227 = arith.mulf %226, %226 : vector<32x64xf32>
    %228 = arith.mulf %226, %227 : vector<32x64xf32>
    %cst_74 = arith.constant 4.471500e-02 : f32
    %229 = vector.broadcast %cst_74 : f32 to vector<32x64xf32>
    %230 = arith.mulf %229, %228 : vector<32x64xf32>
    %231 = arith.addf %226, %230 : vector<32x64xf32>
    %cst_75 = arith.constant 0.797884583 : f32
    %232 = vector.broadcast %cst_75 : f32 to vector<32x64xf32>
    %233 = arith.mulf %232, %231 : vector<32x64xf32>
    %234 = math.tanh %233 : vector<32x64xf32>
    %cst_76 = arith.constant 1.000000e+00 : f32
    %235 = vector.broadcast %cst_76 : f32 to vector<32x64xf32>
    %236 = arith.addf %235, %234 : vector<32x64xf32>
    %cst_77 = arith.constant 5.000000e-01 : f32
    %237 = vector.broadcast %cst_77 : f32 to vector<32x64xf32>
    %238 = arith.mulf %237, %236 : vector<32x64xf32>
    %239 = arith.mulf %226, %238 : vector<32x64xf32>
    %c12 = arith.constant 12 : index
    %c0_78 = arith.constant 0 : index
    %240 = vector.load %arg4[%c12, %c0_78] : memref<48x256xf32, #tpu.memory_space<vmem>>, vector<1x64xf32>
    %c13 = arith.constant 13 : index
    %c0_79 = arith.constant 0 : index
    %241 = vector.load %arg4[%c13, %c0_79] : memref<48x256xf32, #tpu.memory_space<vmem>>, vector<1x64xf32>
    %cst_80 = arith.constant dense<0.000000e+00> : vector<32xf32>
    %242 = vector.multi_reduction <add>, %239, %cst_80 [1] : vector<32x64xf32> to vector<32xf32>
    %243 = vector.shape_cast %242 : vector<32xf32> to vector<32x1xf32>
    %cst_81 = arith.constant 6.400000e+01 : f32
    %244 = vector.broadcast %cst_81 : f32 to vector<32x1xf32>
    %245 = arith.divf %243, %244 : vector<32x1xf32>
    %246 = vector.broadcast %245 : vector<32x1xf32> to vector<32x64xf32>
    %247 = arith.subf %239, %246 : vector<32x64xf32>
    %248 = arith.mulf %247, %247 : vector<32x64xf32>
    %cst_82 = arith.constant dense<0.000000e+00> : vector<32xf32>
    %249 = vector.multi_reduction <add>, %248, %cst_82 [1] : vector<32x64xf32> to vector<32xf32>
    %250 = vector.shape_cast %249 : vector<32xf32> to vector<32x1xf32>
    %cst_83 = arith.constant 6.400000e+01 : f32
    %251 = vector.broadcast %cst_83 : f32 to vector<32x1xf32>
    %252 = arith.divf %250, %251 : vector<32x1xf32>
    %253 = vector.broadcast %245 : vector<32x1xf32> to vector<32x64xf32>
    %254 = arith.subf %239, %253 : vector<32x64xf32>
    %cst_84 = arith.constant 9.99999996E-13 : f32
    %255 = vector.broadcast %cst_84 : f32 to vector<32x1xf32>
    %256 = arith.addf %252, %255 : vector<32x1xf32>
    %257 = math.rsqrt %256 : vector<32x1xf32>
    %258 = vector.broadcast %257 : vector<32x1xf32> to vector<32x64xf32>
    %259 = arith.mulf %254, %258 : vector<32x64xf32>
    %260 = vector.broadcast %240 : vector<1x64xf32> to vector<32x64xf32>
    %261 = arith.mulf %259, %260 : vector<32x64xf32>
    %262 = vector.broadcast %241 : vector<1x64xf32> to vector<32x64xf32>
    %263 = arith.addf %261, %262 : vector<32x64xf32>
    %c0_85 = arith.constant 0 : index
    %c256_86 = arith.constant 256 : index
    %264 = vector.load %arg2[%c0_85, %c256_86] : memref<64x832xbf16, #tpu.memory_space<vmem>>, vector<64x256xbf16>
    %265 = arith.truncf %263 : vector<32x64xf32> to vector<32x64xbf16>
    %cst_87 = arith.constant dense<0.000000e+00> : vector<32x256xf32>
    %266 = tpu.matmul %265, %264, %cst_87 {dimension_numbers = #tpu.dot_dimension_numbers<[1], [0], [0], [1], [0, 0, 1, 1], [], []>} : vector<32x64xbf16>, vector<64x256xbf16>, vector<32x256xf32> -> vector<32x256xf32>
    %c15 = arith.constant 15 : index
    %c0_88 = arith.constant 0 : index
    %267 = vector.load %arg4[%c15, %c0_88] : memref<48x256xf32, #tpu.memory_space<vmem>>, vector<1x256xf32>
    %268 = vector.broadcast %267 : vector<1x256xf32> to vector<32x256xf32>
    %269 = arith.addf %266, %268 : vector<32x256xf32>
    %cst_89 = arith.constant dense<0xFF800000> : vector<32xf32>
    %270 = vector.multi_reduction <maximumf>, %269, %cst_89 [1] : vector<32x256xf32> to vector<32xf32>
    %271 = vector.shape_cast %270 : vector<32xf32> to vector<32x1xf32>
    %272 = vector.broadcast %271 : vector<32x1xf32> to vector<32x256xf32>
    %273 = arith.cmpf oeq, %269, %272 : vector<32x256xf32>
    %c256_i32 = arith.constant 256 : i32
    %274 = vector.broadcast %c256_i32 : i32 to vector<32x256xi32>
    %275 = arith.select %273, %1, %274 : vector<32x256xi1>, vector<32x256xi32>
    %cst_90 = arith.constant dense<2147483647> : vector<32xi32>
    %276 = vector.multi_reduction <minsi>, %275, %cst_90 [1] : vector<32x256xi32> to vector<32xi32>
    %277 = vector.shape_cast %276 : vector<32xi32> to vector<32x1xi32>
    %c103_i32 = arith.constant 103 : i32
    %278 = vector.broadcast %c103_i32 : i32 to vector<32x1xi32>
    %279 = arith.cmpi eq, %0, %278 : vector<32x1xi32>
    %280 = arith.extui %279 : vector<32x1xi1> to vector<32x1xi32>
    %281 = vector.extract_strided_slice %280 {offsets = [0, 0], sizes = [16, 1], strides = [1, 1]} : vector<32x1xi32> to vector<16x1xi32>
    %282 = vector.extract_strided_slice %280 {offsets = [16, 0], sizes = [16, 1], strides = [1, 1]} : vector<32x1xi32> to vector<16x1xi32>
    %283 = arith.addi %281, %282 : vector<16x1xi32>
    %c0_i32 = arith.constant 0 : i32
    %284 = vector.broadcast %c0_i32 : i32 to vector<16x1xi32>
    %285 = arith.cmpi sgt, %283, %284 : vector<16x1xi32>
    %286 = vector.extract_strided_slice %277 {offsets = [0, 0], sizes = [16, 1], strides = [1, 1]} : vector<32x1xi32> to vector<16x1xi32>
    %287 = vector.extract_strided_slice %0 {offsets = [0, 0], sizes = [16, 1], strides = [1, 1]} : vector<32x1xi32> to vector<16x1xi32>
    %288 = arith.select %285, %286, %287 : vector<16x1xi1>, vector<16x1xi32>
    %c0_91 = arith.constant 0 : index
    %c0_92 = arith.constant 0 : index
    %289 = vector.load %arg5[%c0_91, %c0_92] : memref<32x1xi32, #tpu.memory_space<vmem>>, vector<16x1xi32>
    tpu.vector_store %arg5[%c0_91, %c0_92], %288 {strides = array<i32>} : memref<32x1xi32, #tpu.memory_space<vmem>>, vector<16x1xi32>,
    %290 = vector.extract_strided_slice %0 {offsets = [16, 0], sizes = [16, 1], strides = [1, 1]} : vector<32x1xi32> to vector<16x1xi32>
    %c16_93 = arith.constant 16 : index
    %c0_94 = arith.constant 0 : index
    %291 = vector.load %arg5[%c16_93, %c0_94] : memref<32x1xi32, #tpu.memory_space<vmem>>, vector<16x1xi32>
    tpu.vector_store %arg5[%c16_93, %c0_94], %290 {strides = array<i32>} : memref<32x1xi32, #tpu.memory_space<vmem>>, vector<16x1xi32>,
    return
  }
}

</mosaic_0001>

<bundles_post_ra>
// kernel: bert4semire_mlm_forward.1
= control target key start
LH: loop header
LB: loop body
LE: loop exit
PB: predicated region body
PF: predicated region fallthrough
CT: control target
= control target key end

     0   :  { %v2653_v0 = vmov 0   ;;  %vm2112_vm0 = vcmask 7168   ;;  %v25_v21 = vlaneseq  ;;  %v2654_v28 = vmov 1.0|1.0   ;;  %s2655_s13 = smov 64   ;;  %s2657_s24 = smov 96   ;;  %s3207_s0 = inlined_call_operand.vmem [shape: s32[32,1], index: 0, kind: input, shape index: {}]   ;;  %s3208_s5 = inlined_call_operand.vmem [shape: s32[32,1], index: 5, kind: output, shape index: {}]   ;;  %s3209_s3 = inlined_call_operand.vmem [shape: bf16[384,64], index: 3, kind: input, shape index: {}]   ;;  %s3210_s4 = inlined_call_operand.vmem [shape: f32[48,256], index: 4, kind: input, shape index: {}]   ;;  %s3211_s2 = inlined_call_operand.vmem [shape: bf16[64,832], index: 2, kind: input, shape index: {}]   ;;  %s3212_s1 = inlined_call_operand.vmem [shape: f32[2,16], index: 1, kind: input, shape index: {}]  }
   0x1   :  { %2469 = vset.pattern.permute.xlu0 %v2653_v0  ;;  %v21_v1 = vld [vmem:[%s3207_s0] sm:$0xff]  ;;  %2470 = vset.pattern.permute.xlu1 %v2653_v0  ;;  %v2696_v2 = vld [vmem:[%s3207_s0 + $0x10] sm:$0xff]  ;;  %v2707_v3 = vld [vmem:[%s3207_s0 + $0x18] sm:$0xff]  ;;  %vm251_vm13 = vcmask 523264   ;;  %vm450_vm14 = vcmask 261120  }
   0x2   :  { %29 = vperm.xlu0 %2469, %v21_v1   ;;  %35 = vperm.xlu1 %2470, %v2696_v2   ;;  %2115 = vst.msk [vmem:[%s3208_s5 + $0x10] sm:$0xff] %vm2112_vm0, %v2696_v2  ;;  %v22_v4 = vld [vmem:[%s3207_s0 + $0x8] sm:$0xff]  ;;  %2116 = vst.msk [vmem:[%s3208_s5 + $0x18] sm:$0xff] %vm2112_vm0, %v2707_v3  ;;  %v2511_v5 = vld [vmem:[%s3209_s3 + $0x40] sm:$0xff]   ;;  %v2768_v22 = vand.u32 127, %v25_v21 }
   0x3   :  { %401 = vmatprep.mubr.bf16.mxu1 %v2653_v0  ;;  %v2512_v6 = vld [vmem:[%s3209_s3] sm:$0xff]   ;;  %v2513_v7 = vld [vmem:[%s3209_s3 + $0x48] sm:$0xff]   ;;  %2224 = vmatprep.subr.bf16.mxu0 %v2511_v5  ;;  %v2515_v9 = vld [vmem:[%s3209_s3 + $0x50] sm:$0xff]  }
   0x4   :  { %2225 = vmatpush3.bf16.msra.mxu0 %v2512_v6  ;;  %v2514_v8 = vld [vmem:[%s3209_s3 + $0x8] sm:$0xff]   ;;  %v2516_v10 = vld [vmem:[%s3209_s3 + $0x10] sm:$0xff]   ;;  %v2517_v11 = vld [vmem:[%s3209_s3 + $0x58] sm:$0xff]   ;;  %v2771_v25 = vadd.s32 128, %v2768_v22 }
   0x5   :  { %2226 = vmatprep.subr.bf16.mxu0 %v2513_v7  ;;  %v2518_v12 = vld [vmem:[%s3209_s3 + $0x18] sm:$0xff]   ;;  %v2519_v13 = vld [vmem:[%s3209_s3 + $0x60] sm:$0xff]   ;;  %v2521_v15 = vld [vmem:[%s3209_s3 + $0x68] sm:$0xff]  }
   0x6   :  { %32 = vperm.xlu0 %2469, %v22_v4   ;;  %38 = vperm.xlu1 %2470, %v2707_v3   ;;  %v2520_v14 = vld [vmem:[%s3209_s3 + $0x20] sm:$0xff]   ;;  %v2522_v16 = vld [vmem:[%s3209_s3 + $0x28] sm:$0xff]   ;;  %v2523_v17 = vld [vmem:[%s3209_s3 + $0x70] sm:$0xff]  }
   0x7   :  { %v2524_v18 = vld [vmem:[%s3209_s3 + $0x30] sm:$0xff]   ;;  %v2525_v19 = vld [vmem:[%s3209_s3 + $0x78] sm:$0xff]   ;;  %v100_v31 = vld [vmem:[%s3210_s4 + $0x20] sm:$0xff] }
   0x8   :  { %2227 = vmatpush3.bf16.msra.mxu0 %v2514_v8  ;;  %v2526_v20 = vld [vmem:[%s3209_s3 + $0x38] sm:$0xff]   ;;  %v101_v35 = vld [vmem:[%s3210_s4 + $0x30] sm:$0xff]  ;;  %v102_v43 = vld [vmem:[%s3210_s4 + $0x40] sm:$0xff] }
   0x9   :  { %2228 = vmatprep.subr.bf16.mxu0 %v2515_v9  ;;  %v103_v57 = vld [vmem:[%s3210_s4 + $0x50] sm:$0xff]  ;;  %v2527_v7 = vld [vmem:[%s3211_s2 + $0x4] ss:$28 sps:$4 sm:$0xff]   ;;  %v2530_v9 = vld [vmem:[%s3211_s2 + $0x3c] ss:$28 sps:$4 sm:$0xff]  }
   0xa   :  { %v2529_v8 = vld [vmem:[%s3211_s2] ss:$28 sps:$4 sm:$0xff]   ;;  %369 = vmatprep.subr.bf16.mxu1 %v2527_v7  ;;  %vm2876_vm15 = vmpackc.low %vm450_vm14, %vm450_vm14 }
   0xb   :  { %370 = vmatpush1.bf16.msra.mxu1 %v2529_v8 }
   0xc   :  { %2229 = vmatpush3.bf16.msra.mxu0 %v2516_v10  ;;  %v2532_v10 = vld [vmem:[%s3211_s2 + $0x38] ss:$28 sps:$4 sm:$0xff]   ;;  %371 = vmatprep.subr.bf16.mxu1 %v2530_v9 }
   0xd   :  { %2230 = vmatprep.subr.bf16.mxu0 %v2517_v11  ;;  %v2533_v11 = vld [vmem:[%s3211_s2 + $0x74] ss:$28 sps:$4 sm:$0xff]  }
   0xf   :  { %372 = vmatpush1.bf16.msra.mxu1 %v2532_v10 }
  0x10   :  { %2231 = vmatpush3.bf16.msra.mxu0 %v2518_v12  ;;  %v2535_v12 = vld [vmem:[%s3211_s2 + $0x70] ss:$28 sps:$4 sm:$0xff]   ;;  %373 = vmatprep.subr.bf16.mxu1 %v2533_v11 }
  0x11   :  { %2232 = vmatprep.subr.bf16.mxu0 %v2519_v13  ;;  %v2536_v13 = vld [vmem:[%s3211_s2 + $0xac] ss:$28 sps:$4 sm:$0xff]  }
  0x13   :  { %374 = vmatpush1.bf16.msra.mxu1 %v2535_v12 }
  0x14   :  { %2233 = vmatpush3.bf16.msra.mxu0 %v2520_v14  ;;  %v2538_v14 = vld [vmem:[%s3211_s2 + $0xa8] ss:$28 sps:$4 sm:$0xff]   ;;  %375 = vmatprep.subr.bf16.mxu1 %v2536_v13 }
  0x15   :  { %2234 = vmatprep.subr.bf16.mxu0 %v2521_v15  ;;  %v427_v15 = vld [vmem:[%s3210_s4 + $0x3] ss:$0 sm:$0xff] }
  0x17   :  { %376 = vmatpush1.bf16.msra.mxu1 %v2538_v14 }
  0x18   :  { %2235 = vmatpush3.bf16.msra.mxu0 %v2522_v16 }
  0x19   :  { %2236 = vmatprep.subr.bf16.mxu0 %v2523_v17 }
  0x1c   :  { %2237 = vmatpush3.bf16.msra.mxu0 %v2524_v18 }
  0x1d   :  { %2238 = vmatprep.subr.bf16.mxu0 %v2525_v19 }
  0x20   :  { %2239 = vmatpush3.bf16.msra.mxu0 %v2526_v20 }
  0x81   :  { %v30_v23 = vpop.permute.xlu0 %29  ;;  %v36_v24 = vpop.permute.xlu1 %35 }
  0x82   :  { %vm40_vm1 = vcmp.eq.s32.totalorder %v30_v23, %v2768_v22  ;;  %vm45_vm4 = vcmp.eq.s32.totalorder %v36_v24, %v2771_v25  ;;  %vm41_vm7 = vcmp.eq.s32.totalorder %v30_v23, %v2771_v25  ;;  %vm44_vm10 = vcmp.eq.s32.totalorder %v36_v24, %v2768_v22 }
  0x85   :  { %v33_v26 = vpop.permute.xlu0 %32  ;;  %v39_v27 = vpop.permute.xlu1 %38 }
  0x86   :  { %vm42_vm2 = vcmp.eq.s32.totalorder %v33_v26, %v2768_v22  ;;  %vm43_vm3 = vcmp.eq.s32.totalorder %v33_v26, %v2771_v25  ;;  %vm47_vm5 = vcmp.eq.s32.totalorder %v39_v27, %v2771_v25  ;;  %vm46_vm11 = vcmp.eq.s32.totalorder %v39_v27, %v2768_v22 }
  0x87   :  { %vm2147_vm6 = vmpackc.low %vm42_vm2, %vm40_vm1  ;;  %vm544_vm1 = vcmask 130048  }
  0x88   :  { %vm2145_vm8 = vmpackc.low %vm43_vm3, %vm41_vm7 }
  0x89   :  { %2146 = vmatprep.mubr.msk.bf16.mxu0 %vm2145_vm8, %v2654_v28  ;;  %vm2149_vm9 = vmpackc.low %vm47_vm5, %vm45_vm4 }
  0x8a   :  { %2148 = vmatmul.mubr.msk.bf16.vlgmr.msra.gmra.mrb[0].mxu0 %vm2147_vm6, %v2654_v28  ;;  %vm2151_vm12 = vmpackc.low %vm46_vm11, %vm44_vm10  ;;  %vm2100_vm11 = vcmp.eq.s32.totalorder %v2696_v2, 103 }
  0x8b   :  { %2150 = vmatprep.mubr.msk.bf16.mxu0 %vm2149_vm9, %v2654_v28 }
  0x92   :  { %2152 = vmatmul.mubr.msk.bf16.gmra.mrb[4].mxu0 %vm2151_vm12, %v2654_v28 }
 0x15d   :  { %v2240_v29 = vpop.f32.mrb[0].mxu0 }
 0x15e   :  { %v2241_v30 = vpop.f32.mrb[1].mxu0 }
 0x15f   :  { %v2242_v32 = vadd.f32 %v2241_v30, %v2240_v29  ;;  %v2243_v33 = vpop.f32.mrb[2].mxu0 }
 0x160   :  { %v2244_v34 = vpop.f32.mrb[3].mxu0 }
 0x161   :  { %v2245_v36 = vadd.f32 %v2244_v34, %v2243_v33  ;;  %v235_v37 = vadd.f32 %v2242_v32, %v100_v31  ;;  %v249_v32 = vld [vmem:[%s3210_s4] ss:$0 sm:$0xff] }
 0x163   :  { %v252_v38 = vsel %vm251_vm13, %v235_v37, 0.0  ;;  %v238_v39 = vadd.f32 %v2245_v36, %v101_v35  ;;  %v250_v36 = vld [vmem:[%s3210_s4 + $0x1] ss:$0 sm:$0xff] }
 0x164   :  { %253 = vadd.xlane.f32.xlu0 %v252_v38 }
 0x165   :  { %v255_v40 = vsel %vm251_vm13, %v238_v39, 0.0  ;;  %v2246_v41 = vpop.f32.mrb[4].mxu0 }
 0x166   :  { %256 = vadd.xlane.f32.xlu1 %v255_v40  ;;  %v2247_v42 = vpop.f32.mrb[5].mxu0 }
 0x167   :  { %v2248_v44 = vadd.f32 %v2247_v42, %v2246_v41  ;;  %v2249_v47 = vpop.f32.mrb[6].mxu0 }
 0x168   :  { %v2250_v48 = vpop.f32.mrb[7].mxu0 }
 0x169   :  { %v243_v45 = vadd.f32 %v2248_v44, %v102_v43  ;;  %v2251_v49 = vadd.f32 %v2250_v48, %v2249_v47 }
 0x16b   :  { %v258_v46 = vsel %vm251_vm13, %v243_v45, 0.0  ;;  %v246_v62 = vadd.f32 %v2251_v49, %v103_v57 }
 0x16c   :  { %259 = vadd.xlane.f32.xlu1 %v258_v46 }
 0x16d   :  { %v261_v4 = vsel %vm251_vm13, %v246_v62, 0.0 }
 0x17d   :  { %429 = vrot.lane.b32.xlu1 %v427_v15, %s2655_s13 }
 0x1f1   :  { %v254_v50 = vpop.xlane.xlu0 %253 }
 0x1f2   :  { %v265_v51 = vmul.f32 0.015625, %v254_v50 }
 0x1f3   :  { %v257_v52 = vpop.xlane.xlu1 %256 }
 0x1f4   :  { %v269_v53 = vsub.f32 %v235_v37, %v265_v51  ;;  %v266_v54 = vmul.f32 0.015625, %v257_v52 }
 0x1f6   :  { %v270_v55 = vsub.f32 %v238_v39, %v266_v54  ;;  %v273_v56 = vmul.f32 %v269_v53, %v269_v53 }
 0x1f8   :  { %v277_v58 = vsel %vm251_vm13, %v273_v56, 0.0  ;;  %v274_v59 = vmul.f32 %v270_v55, %v270_v55  ;;  %v2858_v56 = vld [vmem:[%s3210_s4 + $0x2] ss:$0 sm:$0xff] }
 0x1f9   :  { %278 = vadd.xlane.f32.xlu0 %v277_v58  ;;  %v260_v60 = vpop.xlane.xlu1 %259 }
 0x1fa   :  { %v267_v61 = vmul.f32 0.015625, %v260_v60  ;;  %v280_v1 = vsel %vm251_vm13, %v274_v59, 0.0 }
 0x1fc   :  { %v2797_v63 = vsub.f32 %v243_v45, %v267_v61  ;;  %v436_v61 = vld [vmem:[%s3210_s4 + $0x4] ss:$0 sm:$0xff] }
 0x1fd   :  { %281 = vadd.xlane.f32.xlu0 %v280_v1  ;;  %v430_v57 = vpop.permute.xlu1 %429 }
 0x1fe   :  { %v275_v5 = vmul.f32 %v2797_v63, %v2797_v63 }
 0x200   :  { %v283_v6 = vsel %vm251_vm13, %v275_v5, 0.0 }
 0x201   :  { %262 = vadd.xlane.f32.xlu0 %v261_v4 }
 0x205   :  { %284 = vadd.xlane.f32.xlu0 %v283_v6 }
 0x286   :  { %v279_v16 = vpop.xlane.xlu0 %278 }
 0x287   :  { %v289_v17 = vmul.f32 0.015625, %v279_v16 }
 0x289   :  { %v293_v18 = vadd.f32 1e-12, %v289_v17 }
 0x28a   :  { %v282_v19 = vpop.xlane.xlu0 %281 }
 0x28b   :  { %2571 = vrsqrt.f32 %v293_v18  ;;  %v290_v20 = vmul.f32 0.015625, %v282_v19 }
 0x28d   :  { %v294_v23 = vadd.f32 1e-12, %v290_v20 }
 0x28e   :  { %v263_v24 = vpop.xlane.xlu0 %262 }
 0x28f   :  { %2573 = vrsqrt.f32 %v294_v23  ;;  %v268_v26 = vmul.f32 0.015625, %v263_v24 }
 0x291   :  { %v272_v27 = vsub.f32 %v246_v62, %v268_v26 }
 0x292   :  { %v285_v41 = vpop.xlane.xlu0 %284 }
 0x293   :  { %v276_v28 = vmul.f32 %v272_v27, %v272_v27  ;;  %v291_v42 = vmul.f32 0.015625, %v285_v41 }
 0x295   :  { %v2572_v29 = vpop.eup %2571  ;;  %v286_v30 = vsel %vm251_vm13, %v276_v28, 0.0  ;;  %v295_v43 = vadd.f32 1e-12, %v291_v42 }
 0x296   :  { %v301_v31 = vmul.f32 %v2572_v29, %v269_v53  ;;  %287 = vadd.xlane.f32.xlu0 %v286_v30  ;;  %v441_v30 = vld [vmem:[%s3212_s1] sm:$0x3]  ;;  %s2656_s1 = smov 32  }
 0x297   :  { %2575 = vrsqrt.f32 %v295_v43 }
 0x298   :  { %v305_v35 = vmul.f32 %v301_v31, %v249_v32  ;;  %v442_v31 = vsub.f32 1.0, %v441_v30 }
 0x299   :  { %v2574_v33 = vpop.eup %2573 }
 0x29a   :  { %v302_v34 = vmul.f32 %v2574_v33, %v270_v55  ;;  %v2839_v38 = vadd.f32 %v305_v35, %v250_v36  ;;  %v2908_v33 = vmul.f32 -1e+09, %v442_v31 }
 0x29c   :  { %v306_v37 = vmul.f32 %v302_v34, %v249_v32 }
 0x29e   :  { %v2841_v39 = vadd.f32 %v306_v37, %v250_v36 }
 0x2a0   :  { %v321_v40 = vpack.c.bf16 %v2841_v39, %v2839_v38 }
 0x2a1   :  { %v2576_v47 = vpop.eup %2575 }
 0x2a2   :  { %2161 = vmatmul.mubr.msk.bf16.vlgmr.msra.gmra.mrb[0].mxu1 %vm251_vm13, %v321_v40  ;;  %v303_v48 = vmul.f32 %v2576_v47, %v2797_v63 }
 0x2a3   :  { %411 = vmatprep.mubr.bf16.mxu1 %v2653_v0 }
 0x2a4   :  { %v307_v51 = vmul.f32 %v303_v48, %v249_v32 }
 0x2a6   :  { %v2848_v53 = vadd.f32 %v307_v51, %v250_v36 }
 0x323   :  { %v288_v44 = vpop.xlane.xlu0 %287 }
 0x324   :  { %v292_v45 = vmul.f32 0.015625, %v288_v44 }
 0x326   :  { %v296_v46 = vadd.f32 1e-12, %v292_v45 }
 0x328   :  { %2577 = vrsqrt.f32 %v296_v46 }
 0x332   :  { %v2578_v49 = vpop.eup %2577 }
 0x333   :  { %v304_v50 = vmul.f32 %v2578_v49, %v272_v27 }
 0x335   :  { %v308_v52 = vmul.f32 %v304_v50, %v249_v32  ;;  %v2906_v32 = vshrl.u32 %v25_v21, 7 }
 0x337   :  { %v2850_v54 = vadd.f32 %v308_v52, %v250_v36  ;;  %v540_v34 = vsub.s32 0, %v2906_v32 }
 0x339   :  { %v322_v55 = vpack.c.bf16 %v2850_v54, %v2848_v53  ;;  %v541_v35 = vrot.slane %v2908_v33, %v540_v34 }
 0x33b   :  { %2162 = vmatmul.mubr.msk.bf16.gmra.mrb[4].mxu1 %vm251_vm13, %v322_v55 }
 0x375   :  { %v403_v58 = vpop.f32.mrb[0].mxu1 }
 0x376   :  { %v423_v59 = vadd.f32 %v2858_v56, %v403_v58  ;;  %v405_v60 = vpop.f32.mrb[1].mxu1  ;;  %v432_v63 = vadd.f32 %v430_v57, %v403_v58 }
 0x377   :  { %v407_v62 = vpop.f32.mrb[2].mxu1  ;;  %v2865_v5 = vadd.f32 %v436_v61, %v405_v60 }
 0x378   :  { %v433_v1 = vadd.f32 %v430_v57, %v407_v62  ;;  %v409_v4 = vpop.f32.mrb[3].mxu1  ;;  %2316 = vmatprep.mubr.msk.f32.mxu1 %vm450_vm14, %v423_v59  ;;  %v424_v15 = vadd.f32 %v2858_v56, %v407_v62 }
 0x379   :  { %v2867_v6 = vadd.f32 %v436_v61, %v409_v4 }
 0x37a   :  { %v2476_v7 = vpack.i.bf16 %v433_v1, %v432_v63 }
 0x37b   :  { %v2481_v8 = vpack.i.bf16 %v2867_v6, %v2865_v5  ;;  %v2430_v9 = vpack.c.bf16 %v2867_v6, %v2865_v5 }
 0x37c   :  { %2472 = vrot.lane.b32.xlu0 %v2476_v7, %s2655_s13 }
 0x3ee   :  { %v2473_v10 = vpop.permute.xlu0 %2472 }
 0x3ef   :  { %v2475_v11 = vunpack.i.h.bf16 %v2473_v10  ;;  %v2474_v12 = vunpack.i.l.bf16 %v2473_v10 }
 0x3f1   :  { %v2424_v14 = vpack.c.bf16 %v2475_v11, %v2474_v12 }
 0x3f3   :  { %2426 = vmatprep.subr.msk.bf16.mxu1 %vm2876_vm15, %v2424_v14 }
 0x3f4   :  { %2429 = vmatpush3.bf16.xpose.msk.msra.mxu1 %vm2876_vm15, %v2424_v14 }
 0x3f5   :  { %2431 = vmatprep.subr.bf16.mxu1 %v2430_v9 }
 0x3fb   :  { %2317 = vmatmul.mubr.msk.f32.vlgmr.msra.gmra.mrb[8].mxu1 %vm450_vm14, %v424_v15 }
 0x3fc   :  { %2433 = vmatpush3.bf16.msra.mxu1 %v2430_v9 }
 0x40e   :  { %v2886_v16 = vpop.f32.mrb[4].mxu1 }
 0x40f   :  { %v415_v17 = vpop.f32.mrb[5].mxu1  ;;  %v434_v19 = vadd.f32 %v430_v57, %v2886_v16 }
 0x410   :  { %v2888_v18 = vpop.f32.mrb[6].mxu1  ;;  %v2892_v24 = vadd.f32 %v436_v61, %v415_v17 }
 0x411   :  { %v435_v20 = vadd.f32 %v430_v57, %v2888_v18  ;;  %v419_v23 = vpop.f32.mrb[7].mxu1 }
 0x412   :  { %v2894_v26 = vadd.f32 %v436_v61, %v419_v23 }
 0x413   :  { %v2896_v27 = vpack.i.bf16 %v435_v20, %v434_v19 }
 0x414   :  { %v2496_v28 = vpack.i.bf16 %v2894_v26, %v2892_v24  ;;  %v2450_v29 = vpack.c.bf16 %v2894_v26, %v2892_v24 }
 0x416   :  { %2451 = vmatprep.subr.bf16.mxu0 %v2450_v29 }
 0x417   :  { %2453 = vmatpush3.bf16.msra.mxu0 %v2450_v29 }
 0x4ce   :  { %v2318_v36 = vpop.f32.mrb[8].mxu1 }
 0x4cf   :  { %v537_v37 = vmul.f32 0.17677669, %v2318_v36  ;;  %v527_v40 = vpop.f32.mrb[9].mxu1 }
 0x4d0   :  { %v536_v41 = vmul.f32 0.17677669, %v527_v40 }
 0x4d1   :  { %v543_v42 = vadd.f32 %v541_v35, %v537_v37 }
 0x4d2   :  { %v542_v43 = vadd.f32 %v541_v35, %v536_v41 }
 0x4d3   :  { %v548_v44 = vsel %vm544_vm1, %v543_v42, -inf }
 0x4d4   :  { %549 = vmax.xlane.f32.xlu0 %v548_v44  ;;  %v545_v21 = vsel %vm544_vm1, %v542_v43, -inf }
 0x4d5   :  { %546 = vmax.xlane.f32.xlu1 %v545_v21 }
 0x4e6   :  { %2477 = vrot.lane.b32.xlu1 %v2476_v7, %s2656_s1 }
 0x4ea   :  { %648 = vrot.lane.b32.xlu0 %v423_v59, %s2657_s24 }
 0x561   :  { %v550_v45 = vpop.xlane.xlu0 %549 }
 0x562   :  { %v552_v46 = vsub.f32 %v543_v42, %v550_v45  ;;  %v547_v47 = vpop.xlane.xlu1 %546 }
 0x563   :  { %v551_v48 = vsub.f32 %v542_v43, %v547_v47 }
 0x564   :  { %v555_v49 = vmul.f32 1.442695, %v552_v46 }
 0x565   :  { %v553_v50 = vmul.f32 1.442695, %v551_v48  ;;  %v649_v10 = vpop.permute.xlu0 %648 }
 0x566   :  { %2579 = vpow2.f32 %v555_v49  ;;  %v2478_v51 = vpop.permute.xlu1 %2477 }
 0x567   :  { %v2480_v52 = vunpack.i.h.bf16 %v2478_v51  ;;  %v2479_v55 = vunpack.i.l.bf16 %v2478_v51  ;;  %2581 = vpow2.f32 %v553_v50 }
 0x569   :  { %v2434_v57 = vpack.c.bf16 %v2480_v52, %v2479_v55 }
 0x56b   :  { %2436 = vmatprep.subr.msk.bf16.mxu1 %vm2876_vm15, %v2434_v57 }
 0x570   :  { %v2580_v58 = vpop.eup %2579 }
 0x571   :  { %v560_v60 = vsel %vm544_vm1, %v2580_v58, 0.0  ;;  %v2582_v61 = vpop.eup %2581 }
 0x572   :  { %561 = vadd.xlane.f32.xlu1 %v560_v60  ;;  %v557_v59 = vsel %vm544_vm1, %v2582_v61, 0.0 }
 0x576   :  { %558 = vadd.xlane.f32.xlu1 %v557_v59  ;;  %v426_v59 = vadd.f32 %v2858_v56, %v2888_v18 }
 0x587   :  { %650 = vrot.lane.b32.xlu1 %v424_v15, %s2657_s24 }
 0x5ff   :  { %v562_v62 = vpop.xlane.xlu1 %561 }
 0x600   :  { %2583 = vrcp.f32 %v562_v62 }
 0x603   :  { %v559_v63 = vpop.xlane.xlu1 %558 }
 0x604   :  { %2585 = vrcp.f32 %v559_v63 }
 0x607   :  { %v651_v11 = vpop.permute.xlu1 %650 }
 0x60a   :  { %v2584_v1 = vpop.eup %2583 }
 0x60b   :  { %v566_v9 = vmul.f32 %v2584_v1, %v2580_v58  ;;  %v959_v1 = vsub.s32 1, %v2906_v32 }
 0x60e   :  { %v2586_v4 = vpop.eup %2585 }
 0x60f   :  { %v565_v7 = vmul.f32 %v2586_v4, %v2582_v61  ;;  %v960_v4 = vrot.slane %v2908_v33, %v959_v1 }
 0x611   :  { %2323 = vmatprep.mubr.msk.f32.mxu1 %vm544_vm1, %v565_v7 }
 0x612   :  { %2324 = vmatmul.mubr.msk.f32.vlgmr.msra.gmra.mrb[10].mxu1 %vm544_vm1, %v566_v9 }
 0x613   :  { %2439 = vmatpush3.bf16.xpose.msk.msra.mxu1 %vm2876_vm15, %v2434_v57  ;;  %2330 = vmatprep.mubr.msk.f32.mxu1 %vm450_vm14, %v649_v10 }
 0x61a   :  { %2331 = vmatmul.mubr.msk.f32.vlgmr.msra.gmra.mrb[12].mxu1 %vm450_vm14, %v651_v11 }
 0x6e5   :  { %v2929_v12 = vpop.f32.mrb[10].mxu1 }
 0x6e6   :  { %v2931_v14 = vpop.f32.mrb[11].mxu1 }
 0x6ed   :  { %v2332_v15 = vpop.f32.mrb[12].mxu1 }
 0x6ee   :  { %v740_v17 = vmul.f32 0.17677669, %v2332_v15  ;;  %v730_v19 = vpop.f32.mrb[13].mxu1 }
 0x6ef   :  { %v739_v20 = vmul.f32 0.17677669, %v730_v19 }
 0x6f0   :  { %v742_v23 = vadd.f32 %v740_v17, %v541_v35 }
 0x6f1   :  { %v741_v29 = vadd.f32 %v739_v20, %v541_v35 }
 0x6f2   :  { %v746_v30 = vsel %vm544_vm1, %v742_v23, -inf }
 0x6f3   :  { %747 = vmax.xlane.f32.xlu0 %v746_v30  ;;  %v743_v31 = vsel %vm544_vm1, %v741_v29, -inf }
 0x6f4   :  { %744 = vmax.xlane.f32.xlu1 %v743_v31 }
 0x780   :  { %v748_v36 = vpop.xlane.xlu0 %747 }
 0x781   :  { %v750_v37 = vsub.f32 %v742_v23, %v748_v36  ;;  %v745_v40 = vpop.xlane.xlu1 %744 }
 0x782   :  { %v749_v41 = vsub.f32 %v741_v29, %v745_v40 }
 0x783   :  { %v753_v42 = vmul.f32 1.442695, %v750_v37 }
 0x784   :  { %v751_v43 = vmul.f32 1.442695, %v749_v41 }
 0x785   :  { %2587 = vpow2.f32 %v753_v42 }
 0x786   :  { %2589 = vpow2.f32 %v751_v43 }
 0x78f   :  { %v2588_v44 = vpop.eup %2587 }
 0x790   :  { %v2590_v21 = vpop.eup %2589  ;;  %v758_v45 = vsel %vm544_vm1, %v2588_v44, 0.0 }
 0x791   :  { %759 = vadd.xlane.f32.xlu1 %v758_v45  ;;  %v755_v35 = vsel %vm544_vm1, %v2590_v21, 0.0 }
 0x792   :  { %756 = vadd.xlane.f32.xlu0 %v755_v35 }
 0x7a2   :  { %2487 = vrot.lane.b32.xlu1 %v2896_v27, %s2655_s13 }
 0x7a8   :  { %2482 = vrot.lane.b32.xlu0 %v2481_v8, %s2657_s24  ;;  %v425_v8 = vadd.f32 %v2858_v56, %v2886_v16 }
 0x81e   :  { %v760_v46 = vpop.xlane.xlu1 %759 }
 0x81f   :  { %2591 = vrcp.f32 %v760_v46  ;;  %v757_v47 = vpop.xlane.xlu0 %756 }
 0x820   :  { %2593 = vrcp.f32 %v757_v47 }
 0x822   :  { %v2488_v48 = vpop.permute.xlu1 %2487 }
 0x823   :  { %v2483_v49 = vpop.permute.xlu0 %2482  ;;  %v2490_v50 = vunpack.i.h.bf16 %v2488_v48  ;;  %v2489_v51 = vunpack.i.l.bf16 %v2488_v48 }
 0x824   :  { %v2485_v52 = vunpack.i.h.bf16 %v2483_v49  ;;  %v2484_v55 = vunpack.i.l.bf16 %v2483_v49 }
 0x825   :  { %v2444_v58 = vpack.c.bf16 %v2490_v50, %v2489_v51 }
 0x826   :  { %v2440_v57 = vpack.c.bf16 %v2485_v52, %v2484_v55 }
 0x828   :  { %2441 = vmatprep.subr.bf16.mxu1 %v2440_v57 }
 0x829   :  { %v2592_v60 = vpop.eup %2591  ;;  %2443 = vmatpush3.bf16.msra.mxu1 %v2440_v57 }
 0x82a   :  { %v2594_v61 = vpop.eup %2593  ;;  %2446 = vmatprep.subr.msk.bf16.mxu1 %vm2876_vm15, %v2444_v58  ;;  %v764_v6 = vmul.f32 %v2592_v60, %v2588_v44 }
 0x82b   :  { %v763_v5 = vmul.f32 %v2594_v61, %v2590_v21 }
 0x82d   :  { %2337 = vmatprep.mubr.msk.f32.mxu1 %vm544_vm1, %v763_v5 }
 0x82e   :  { %2338 = vmatmul.mubr.msk.f32.vlgmr.msra.gmra.mrb[14].mxu1 %vm544_vm1, %v764_v6 }
 0x82f   :  { %2344 = vmatprep.mubr.msk.f32.mxu1 %vm450_vm14, %v425_v8 }
 0x832   :  { %2449 = vmatpush3.bf16.xpose.msk.msra.mxu1 %vm2876_vm15, %v2444_v58 }
 0x839   :  { %2345 = vmatmul.mubr.msk.f32.vlgmr.msra.gmra.mrb[16].mxu1 %vm450_vm14, %v426_v59 }
 0x901   :  { %v2955_v62 = vpop.f32.mrb[14].mxu1 }
 0x902   :  { %v2957_v63 = vpop.f32.mrb[15].mxu1 }
 0x903   :  { %v2501_v16 = vpack.i.bf16 %v2955_v62, %v2957_v63 }
 0x90c   :  { %v2346_v7 = vpop.f32.mrb[16].mxu1 }
 0x90d   :  { %v956_v9 = vmul.f32 0.17677669, %v2346_v7  ;;  %v946_v10 = vpop.f32.mrb[17].mxu1 }
 0x90e   :  { %v955_v11 = vmul.f32 0.17677669, %v946_v10 }
 0x90f   :  { %v962_v56 = vadd.f32 %v960_v4, %v956_v9 }
 0x910   :  { %v961_v18 = vadd.f32 %v960_v4, %v955_v11 }
 0x911   :  { %v966_v15 = vsel %vm544_vm1, %v962_v56, -inf }
 0x912   :  { %967 = vmax.xlane.f32.xlu0 %v966_v15  ;;  %v963_v17 = vsel %vm544_vm1, %v961_v18, -inf }
 0x913   :  { %964 = vmax.xlane.f32.xlu1 %v963_v17 }
 0x99f   :  { %v968_v19 = vpop.xlane.xlu0 %967 }
 0x9a0   :  { %v970_v20 = vsub.f32 %v962_v56, %v968_v19  ;;  %v965_v23 = vpop.xlane.xlu1 %964 }
 0x9a1   :  { %v969_v29 = vsub.f32 %v961_v18, %v965_v23 }
 0x9a2   :  { %v973_v30 = vmul.f32 1.442695, %v970_v20 }
 0x9a3   :  { %v971_v31 = vmul.f32 1.442695, %v969_v29 }
 0x9a4   :  { %2595 = vpow2.f32 %v973_v30 }
 0x9a5   :  { %2597 = vpow2.f32 %v971_v31 }
 0x9ae   :  { %v2596_v33 = vpop.eup %2595 }
 0x9af   :  { %v2598_v36 = vpop.eup %2597  ;;  %v978_v37 = vsel %vm544_vm1, %v2596_v33, 0.0 }
 0x9b0   :  { %979 = vadd.xlane.f32.xlu1 %v978_v37  ;;  %v975_v40 = vsel %vm544_vm1, %v2598_v36, 0.0 }
 0x9b1   :  { %976 = vadd.xlane.f32.xlu0 %v975_v40  ;;  %v2542_v40 = vld [vmem:[%s3211_s2 + $0xbc] ss:$28 sps:$4 sm:$0xff]  }
 0x9c1   :  { %1066 = vrot.lane.b32.xlu1 %v425_v8, %s2657_s24 }
 0x9c5   :  { %1068 = vrot.lane.b32.xlu1 %v426_v59, %s2657_s24 }
 0x9c7   :  { %2492 = vrot.lane.b32.xlu0 %v2896_v27, %s2656_s1 }
 0xa3d   :  { %v980_v41 = vpop.xlane.xlu1 %979 }
 0xa3e   :  { %2599 = vrcp.f32 %v980_v41  ;;  %v977_v42 = vpop.xlane.xlu0 %976 }
 0xa3f   :  { %2601 = vrcp.f32 %v977_v42 }
 0xa41   :  { %v1067_v49 = vpop.permute.xlu1 %1066 }
 0xa42   :  { %v2493_v43 = vpop.permute.xlu0 %2492 }
 0xa43   :  { %v2495_v44 = vunpack.i.h.bf16 %v2493_v43  ;;  %v2494_v21 = vunpack.i.l.bf16 %v2493_v43 }
 0xa45   :  { %v2454_v45 = vpack.c.bf16 %v2495_v44, %v2494_v21  ;;  %v1069_v27 = vpop.permute.xlu1 %1068 }
 0xa47   :  { %2456 = vmatprep.subr.msk.bf16.mxu0 %vm2876_vm15, %v2454_v45 }
 0xa48   :  { %v2600_v35 = vpop.eup %2599 }
 0xa49   :  { %v2602_v46 = vpop.eup %2601  ;;  %v984_v48 = vmul.f32 %v2600_v35, %v2596_v33 }
 0xa4a   :  { %v983_v47 = vmul.f32 %v2602_v46, %v2598_v36 }
 0xa4c   :  { %2351 = vmatprep.mubr.msk.f32.mxu0 %vm544_vm1, %v983_v47 }
 0xa4d   :  { %2352 = vmatmul.mubr.msk.f32.vlgmr.msra.gmra.mrb[8].mxu0 %vm544_vm1, %v984_v48  ;;  %v1292_v48 = vld [vmem:[%s3210_s4 + $0x5] ss:$0 sm:$0xff] }
 0xa4e   :  { %2459 = vmatpush3.bf16.xpose.msk.msra.mxu0 %vm2876_vm15, %v2454_v45  ;;  %2358 = vmatprep.mubr.msk.f32.mxu0 %vm450_vm14, %v1067_v49 }
 0xa55   :  { %2359 = vmatmul.mubr.msk.f32.vlgmr.msra.gmra.mrb[10].mxu0 %vm450_vm14, %v1069_v27 }
 0xb20   :  { %v2981_v50 = vpop.f32.mrb[8].mxu0 }
 0xb21   :  { %v2983_v51 = vpop.f32.mrb[9].mxu0 }
 0xb28   :  { %v2360_v52 = vpop.f32.mrb[10].mxu0 }
 0xb29   :  { %v1158_v55 = vmul.f32 0.17677669, %v2360_v52  ;;  %v1148_v57 = vpop.f32.mrb[11].mxu0 }
 0xb2a   :  { %v1157_v58 = vmul.f32 0.17677669, %v1148_v57 }
 0xb2b   :  { %v1160_v60 = vadd.f32 %v1158_v55, %v960_v4 }
 0xb2c   :  { %v1159_v61 = vadd.f32 %v1157_v58, %v960_v4 }
 0xb2d   :  { %v1164_v5 = vsel %vm544_vm1, %v1160_v60, -inf }
 0xb2e   :  { %1165 = vmax.xlane.f32.xlu1 %v1164_v5  ;;  %v1161_v13 = vsel %vm544_vm1, %v1159_v61, -inf }
 0xb2f   :  { %1162 = vmax.xlane.f32.xlu0 %v1161_v13 }
 0xb3f   :  { %2497 = vrot.lane.b32.xlu1 %v2496_v28, %s2657_s24 }
 0xbbb   :  { %v1166_v6 = vpop.xlane.xlu1 %1165 }
 0xbbc   :  { %v1168_v8 = vsub.f32 %v1160_v60, %v1166_v6  ;;  %v1163_v59 = vpop.xlane.xlu0 %1162 }
 0xbbd   :  { %v1167_v7 = vsub.f32 %v1159_v61, %v1163_v59 }
 0xbbe   :  { %v1171_v9 = vmul.f32 1.442695, %v1168_v8 }
 0xbbf   :  { %v1169_v10 = vmul.f32 1.442695, %v1167_v7  ;;  %v2498_v11 = vpop.permute.xlu1 %2497 }
 0xbc0   :  { %v2500_v56 = vunpack.i.h.bf16 %v2498_v11  ;;  %v2499_v4 = vunpack.i.l.bf16 %v2498_v11 }
 0xbc1   :  { %2603 = vpow2.f32 %v1169_v10 }
 0xbc2   :  { %v2460_v18 = vpack.c.bf16 %v2500_v56, %v2499_v4  ;;  %2605 = vpow2.f32 %v1171_v9 }
 0xbc4   :  { %2461 = vmatprep.subr.bf16.mxu1 %v2460_v18 }
 0xbc5   :  { %2463 = vmatpush3.bf16.msra.mxu1 %v2460_v18 }
 0xbcb   :  { %v2604_v15 = vpop.eup %2603 }
 0xbcc   :  { %v1173_v17 = vsel %vm544_vm1, %v2604_v15, 0.0  ;;  %v2606_v19 = vpop.eup %2605 }
 0xbcd   :  { %1174 = vadd.xlane.f32.xlu0 %v1173_v17  ;;  %v1176_v24 = vsel %vm544_vm1, %v2606_v19, 0.0 }
 0xbd1   :  { %1177 = vadd.xlane.f32.xlu0 %v1176_v24 }
 0xbe7   :  { %2502 = vrot.lane.b32.xlu0 %v2501_v16, %s2656_s1  ;;  %v2539_v16 = vld [vmem:[%s3211_s2 + $0x14] ss:$28 sps:$4 sm:$0xff]  }
 0xbe8   :  { %2368 = vmatprep.subr.bf16.mxu1 %v2539_v16 }
 0xc5a   :  { %v1175_v26 = vpop.xlane.xlu0 %1174 }
 0xc5b   :  { %2607 = vrcp.f32 %v1175_v26 }
 0xc5e   :  { %v1178_v28 = vpop.xlane.xlu0 %1177 }
 0xc5f   :  { %2609 = vrcp.f32 %v1178_v28 }
 0xc62   :  { %v2503_v20 = vpop.permute.xlu0 %2502 }
 0xc63   :  { %v2505_v23 = vunpack.i.h.bf16 %v2503_v20  ;;  %v2504_v29 = vunpack.i.l.bf16 %v2503_v20 }
 0xc65   :  { %v2608_v30 = vpop.eup %2607  ;;  %v863_v31 = vsel %vm450_vm14, %v2929_v12, %v2505_v23  ;;  %v862_v33 = vsel %vm450_vm14, %v2931_v14, %v2504_v29  ;;  %v2540_v12 = vld [vmem:[%s3211_s2 + $0x4c] ss:$28 sps:$4 sm:$0xff]   ;;  %v2541_v14 = vld [vmem:[%s3211_s2 + $0x84] ss:$28 sps:$4 sm:$0xff]  }
 0xc66   :  { %v1290_v36 = vpack.c.bf16 %v863_v31, %v862_v33  ;;  %v1181_v37 = vmul.f32 %v2608_v30, %v2604_v15  ;;  %v2543_v31 = vld [vmem:[%s3211_s2 + $0x10] ss:$28 sps:$4 sm:$0xff]   ;;  %v2544_v33 = vld [vmem:[%s3211_s2 + $0x48] ss:$28 sps:$4 sm:$0xff]  }
 0xc67   :  { %2380 = vmatprep.subr.bf16.mxu0 %v2543_v31 }
 0xc68   :  { %2365 = vmatprep.mubr.msk.f32.mxu1 %vm544_vm1, %v1181_v37  ;;  %2381 = vmatpush3.bf16.msra.mxu0 %v2543_v31  ;;  %v2546_v37 = vld [vmem:[%s3211_s2 + $0xb8] ss:$28 sps:$4 sm:$0xff]  }
 0xc69   :  { %v2610_v62 = vpop.eup %2609  ;;  %2382 = vmatprep.subr.bf16.mxu0 %v2544_v33 }
 0xc6a   :  { %v1182_v63 = vmul.f32 %v2610_v62, %v2606_v19 }
 0xc6c   :  { %2366 = vmatmul.mubr.msk.f32.vlgmr.msra.gmra.mrb[18].mxu1 %vm544_vm1, %v1182_v63  ;;  %2383 = vmatpush3.bf16.msra.mxu0 %v2544_v33 }
 0xc6d   :  { %2376 = vmatprep.mubr.msk.bf16.mxu1 %vm251_vm13, %v1290_v36  ;;  %2369 = vmatpush3.bf16.msra.mxu1 %v2539_v16  ;;  %v2545_v36 = vld [vmem:[%s3211_s2 + $0x80] ss:$28 sps:$4 sm:$0xff]  }
 0xc6e   :  { %2370 = vmatprep.subr.bf16.mxu1 %v2540_v12  ;;  %2384 = vmatprep.subr.bf16.mxu0 %v2545_v36 }
 0xc70   :  { %2385 = vmatpush3.bf16.msra.mxu0 %v2545_v36 }
 0xc71   :  { %2371 = vmatpush3.bf16.msra.mxu1 %v2540_v12  ;;  %2386 = vmatprep.subr.bf16.mxu0 %v2546_v37 }
 0xc72   :  { %2372 = vmatprep.subr.bf16.mxu1 %v2541_v14 }
 0xc74   :  { %2387 = vmatpush3.bf16.msra.mxu0 %v2546_v37 }
 0xc75   :  { %2373 = vmatpush3.bf16.msra.mxu1 %v2541_v14 }
 0xc76   :  { %2374 = vmatprep.subr.bf16.mxu1 %v2542_v40 }
 0xc79   :  { %2375 = vmatpush3.bf16.msra.mxu1 %v2542_v40 }
 0xd3f   :  { %v2367_v41 = vpop.f32.mrb[18].mxu1 }
 0xd40   :  { %v1263_v42 = vpop.f32.mrb[19].mxu1 }
 0xd41   :  { %v2506_v43 = vpack.i.bf16 %v2367_v41, %v1263_v42 }
 0xd43   :  { %2507 = vrot.lane.b32.xlu1 %v2506_v43, %s2656_s1 }
 0xdb5   :  { %v2508_v44 = vpop.permute.xlu1 %2507 }
 0xdb6   :  { %v2510_v21 = vunpack.i.h.bf16 %v2508_v44  ;;  %v2509_v45 = vunpack.i.l.bf16 %v2508_v44 }
 0xdb8   :  { %v1281_v35 = vsel %vm450_vm14, %v2981_v50, %v2510_v21  ;;  %v1280_v46 = vsel %vm450_vm14, %v2983_v51, %v2509_v45 }
 0xdb9   :  { %v1291_v47 = vpack.c.bf16 %v1281_v35, %v1280_v46  ;;  %v1376_v46 = vld [vmem:[%s3210_s4 + $0x6] ss:$0 sm:$0xff] }
 0xdbb   :  { %2377 = vmatmul.mubr.msk.bf16.vlgmr.msra.gmra.mrb[20].mxu1 %vm251_vm13, %v1291_v47 }
 0xe8e   :  { %v2378_v49 = vpop.f32.mrb[20].mxu1 }
 0xe8f   :  { %v1357_v27 = vpop.f32.mrb[21].mxu1  ;;  %v1366_v60 = vadd.f32 %v2378_v49, %v1292_v48 }
 0xe90   :  { %v1358_v52 = vadd.f32 %v1357_v27, %v1292_v48  ;;  %v2379_v55 = vpop.f32.mrb[22].mxu1 }
 0xe91   :  { %v1369_v57 = vadd.f32 %v2379_v55, %v1292_v48  ;;  %v1360_v58 = vpop.f32.mrb[23].mxu1  ;;  %v1374_v8 = vadd.f32 %v1366_v60, %v2848_v53 }
 0xe92   :  { %v1361_v61 = vadd.f32 %v1360_v58, %v1292_v48  ;;  %v1372_v50 = vadd.f32 %v1358_v52, %v2839_v38  ;;  %v1377_v52 = vld [vmem:[%s3210_s4 + $0x7] ss:$0 sm:$0xff] }
 0xe93   :  { %v1375_v13 = vadd.f32 %v1369_v57, %v2850_v54  ;;  %v1384_v7 = vsel %vm251_vm13, %v1374_v8, 0.0 }
 0xe94   :  { %v1378_v5 = vsel %vm251_vm13, %v1372_v50, 0.0  ;;  %v1373_v51 = vadd.f32 %v1361_v61, %v2841_v39 }
 0xe95   :  { %1379 = vadd.xlane.f32.xlu1 %v1378_v5  ;;  %v1387_v59 = vsel %vm251_vm13, %v1375_v13, 0.0 }
 0xe96   :  { %v1381_v6 = vsel %vm251_vm13, %v1373_v51, 0.0 }
 0xe97   :  { %1382 = vadd.xlane.f32.xlu0 %v1381_v6 }
 0xe99   :  { %1388 = vadd.xlane.f32.xlu1 %v1387_v59 }
 0xe9b   :  { %1385 = vadd.xlane.f32.xlu0 %v1384_v7 }
 0xf22   :  { %v1380_v9 = vpop.xlane.xlu1 %1379 }
 0xf23   :  { %v1390_v38 = vmul.f32 0.015625, %v1380_v9  ;;  %v2547_v9 = vld [vmem:[%s3209_s3 + $0x80] sm:$0xff]  }
 0xf24   :  { %v1383_v10 = vpop.xlane.xlu0 %1382  ;;  %2392 = vmatprep.subr.bf16.mxu1 %v2547_v9 }
 0xf25   :  { %v1394_v11 = vsub.f32 %v1372_v50, %v1390_v38  ;;  %v1391_v56 = vmul.f32 0.015625, %v1383_v10  ;;  %2393 = vmatpush3.bf16.msra.mxu1 %v2547_v9  ;;  %v2548_v38 = vld [vmem:[%s3209_s3 + $0x88] sm:$0xff]   ;;  %v2549_v10 = vld [vmem:[%s3209_s3 + $0x90] sm:$0xff]  }
 0xf26   :  { %v1389_v39 = vpop.xlane.xlu1 %1388  ;;  %2394 = vmatprep.subr.bf16.mxu1 %v2548_v38 }
 0xf27   :  { %v1395_v4 = vsub.f32 %v1373_v51, %v1391_v56  ;;  %v1393_v54 = vmul.f32 0.015625, %v1389_v39  ;;  %v1398_v18 = vmul.f32 %v1394_v11, %v1394_v11  ;;  %v2551_v56 = vld [vmem:[%s3209_s3 + $0xa0] sm:$0xff]   ;;  %v2552_v39 = vld [vmem:[%s3209_s3 + $0xa8] sm:$0xff]  }
 0xf28   :  { %v1386_v15 = vpop.xlane.xlu0 %1385 }
 0xf29   :  { %v1397_v17 = vsub.f32 %v1375_v13, %v1393_v54  ;;  %v1392_v19 = vmul.f32 0.015625, %v1386_v15  ;;  %v1402_v53 = vsel %vm251_vm13, %v1398_v18, 0.0  ;;  %v1399_v24 = vmul.f32 %v1395_v4, %v1395_v4  ;;  %2395 = vmatpush3.bf16.msra.mxu1 %v2548_v38  ;;  %v2554_v54 = vld [vmem:[%s3209_s3 + $0xb8] sm:$0xff]   ;;  %v1448_v18 = vld [vmem:[%s3210_s4 + $0x16] ss:$0 sm:$0xff] }
 0xf2a   :  { %1403 = vadd.xlane.f32.xlu0 %v1402_v53  ;;  %2396 = vmatprep.subr.bf16.mxu1 %v2549_v10 }
 0xf2b   :  { %v1396_v26 = vsub.f32 %v1374_v8, %v1392_v19  ;;  %v1405_v28 = vsel %vm251_vm13, %v1399_v24, 0.0  ;;  %v1401_v20 = vmul.f32 %v1397_v17, %v1397_v17 }
 0xf2c   :  { %1406 = vadd.xlane.f32.xlu1 %v1405_v28 }
 0xf2d   :  { %v1400_v23 = vmul.f32 %v1396_v26, %v1396_v26  ;;  %v1411_v30 = vsel %vm251_vm13, %v1401_v20, 0.0  ;;  %2397 = vmatpush3.bf16.msra.mxu1 %v2549_v10 }
 0xf2f   :  { %v1408_v29 = vsel %vm251_vm13, %v1400_v23, 0.0 }
 0xf30   :  { %1409 = vadd.xlane.f32.xlu0 %v1408_v29  ;;  %1412 = vadd.xlane.f32.xlu1 %v1411_v30 }
 0xfb7   :  { %v1404_v62 = vpop.xlane.xlu0 %1403 }
 0xfb8   :  { %v1414_v63 = vmul.f32 0.015625, %v1404_v62 }
 0xfb9   :  { %v1407_v16 = vpop.xlane.xlu1 %1406 }
 0xfba   :  { %v1418_v12 = vadd.f32 1e-12, %v1414_v63  ;;  %v1415_v14 = vmul.f32 0.015625, %v1407_v16 }
 0xfbc   :  { %2611 = vrsqrt.f32 %v1418_v12  ;;  %v1419_v40 = vadd.f32 1e-12, %v1415_v14 }
 0xfbd   :  { %v1410_v41 = vpop.xlane.xlu0 %1409  ;;  %v1413_v42 = vpop.xlane.xlu1 %1412 }
 0xfbe   :  { %2613 = vrsqrt.f32 %v1419_v40  ;;  %v1416_v43 = vmul.f32 0.015625, %v1410_v41  ;;  %v1417_v44 = vmul.f32 0.015625, %v1413_v42 }
 0xfc0   :  { %v1420_v21 = vadd.f32 1e-12, %v1416_v43  ;;  %v1421_v45 = vadd.f32 1e-12, %v1417_v44 }
 0xfc2   :  { %2615 = vrsqrt.f32 %v1420_v21 }
 0xfc3   :  { %2617 = vrsqrt.f32 %v1421_v45 }
 0xfc6   :  { %v2612_v35 = vpop.eup %2611 }
 0xfc7   :  { %v1426_v47 = vmul.f32 %v2612_v35, %v1394_v11  ;;  %v2550_v11 = vld [vmem:[%s3209_s3 + $0x98] sm:$0xff]  }
 0xfc8   :  { %v2614_v48 = vpop.eup %2613  ;;  %2398 = vmatprep.subr.bf16.mxu1 %v2550_v11 }
 0xfc9   :  { %v1427_v49 = vmul.f32 %v2614_v48, %v1395_v4  ;;  %v1430_v27 = vmul.f32 %v1426_v47, %v1376_v46  ;;  %2399 = vmatpush3.bf16.msra.mxu1 %v2550_v11  ;;  %v2553_v4 = vld [vmem:[%s3209_s3 + $0xb0] sm:$0xff]  }
 0xfca   :  { %2400 = vmatprep.subr.bf16.mxu1 %v2551_v56  ;;  %v1582_v11 = vld [vmem:[%s3210_s4 + $0x10] ss:$0 sm:$0xff] }
 0xfcb   :  { %v1431_v55 = vmul.f32 %v1427_v49, %v1376_v46  ;;  %v3055_v61 = vadd.f32 %v1430_v27, %v1377_v52 }
 0xfcc   :  { %v2616_v57 = vpop.eup %2615 }
 0xfcd   :  { %v2618_v58 = vpop.eup %2617  ;;  %v1428_v60 = vmul.f32 %v2616_v57, %v1396_v26  ;;  %v3057_v50 = vadd.f32 %v1431_v55, %v1377_v52  ;;  %2401 = vmatpush3.bf16.msra.mxu1 %v2551_v56 }
 0xfce   :  { %v1429_v5 = vmul.f32 %v2618_v58, %v1397_v17  ;;  %2402 = vmatprep.subr.bf16.mxu1 %v2552_v39 }
 0xfcf   :  { %v1432_v51 = vmul.f32 %v1428_v60, %v1376_v46  ;;  %v1446_v13 = vpack.c.bf16 %v3057_v50, %v3055_v61 }
 0xfd0   :  { %v1433_v6 = vmul.f32 %v1429_v5, %v1376_v46 }
 0xfd1   :  { %2388 = vmatprep.mubr.msk.bf16.mxu0 %vm251_vm13, %v1446_v13  ;;  %v3062_v8 = vadd.f32 %v1432_v51, %v1377_v52  ;;  %2403 = vmatpush3.bf16.msra.mxu1 %v2552_v39 }
 0xfd2   :  { %v3064_v59 = vadd.f32 %v1433_v6, %v1377_v52  ;;  %2404 = vmatprep.subr.bf16.mxu1 %v2553_v4 }
 0xfd4   :  { %v1447_v7 = vpack.c.bf16 %v3064_v59, %v3062_v8 }
 0xfd5   :  { %2405 = vmatpush3.bf16.msra.mxu1 %v2553_v4 }
 0xfd6   :  { %2389 = vmatmul.mubr.msk.bf16.vlgmr.msra.gmra.mrb[12].mxu0 %vm251_vm13, %v1447_v7  ;;  %2406 = vmatprep.subr.bf16.mxu1 %v2554_v54 }
 0xfd9   :  { %2407 = vmatpush3.bf16.msra.mxu1 %v2554_v54 }
0x10a9   :  { %v2390_v15 = vpop.f32.mrb[12].mxu0 }
0x10aa   :  { %v1522_v17 = vadd.f32 %v2390_v15, %v1448_v18  ;;  %v1513_v19 = vpop.f32.mrb[13].mxu0 }
0x10ab   :  { %v1514_v53 = vadd.f32 %v1513_v19, %v1448_v18  ;;  %v2391_v24 = vpop.f32.mrb[14].mxu0 }
0x10ac   :  { %v1530_v26 = vmul.f32 %v1522_v17, %v1522_v17  ;;  %v1525_v28 = vadd.f32 %v2391_v24, %v1448_v18  ;;  %v1516_v20 = vpop.f32.mrb[15].mxu0 }
0x10ad   :  { %v1528_v23 = vmul.f32 %v1514_v53, %v1514_v53  ;;  %v1517_v29 = vadd.f32 %v1516_v20, %v1448_v18 }
0x10ae   :  { %v1534_v30 = vmul.f32 %v1530_v26, %v1522_v17  ;;  %v1531_v31 = vmul.f32 %v1525_v28, %v1525_v28 }
0x10af   :  { %v1532_v33 = vmul.f32 %v1528_v23, %v1514_v53  ;;  %v1529_v36 = vmul.f32 %v1517_v29, %v1517_v29 }
0x10b0   :  { %v1538_v37 = vmul.f32 0.044715, %v1534_v30  ;;  %v1535_v62 = vmul.f32 %v1531_v31, %v1525_v28 }
0x10b1   :  { %v1536_v63 = vmul.f32 0.044715, %v1532_v33  ;;  %v1533_v16 = vmul.f32 %v1529_v36, %v1517_v29 }
0x10b2   :  { %v1542_v12 = vadd.f32 %v1538_v37, %v1522_v17  ;;  %v1539_v14 = vmul.f32 0.044715, %v1535_v62 }
0x10b3   :  { %v1540_v40 = vadd.f32 %v1536_v63, %v1514_v53  ;;  %v1537_v41 = vmul.f32 0.044715, %v1533_v16 }
0x10b4   :  { %v1546_v42 = vmul.f32 0.7978846, %v1542_v12  ;;  %v1543_v43 = vadd.f32 %v1539_v14, %v1525_v28 }
0x10b5   :  { %v1544_v44 = vmul.f32 0.7978846, %v1540_v40  ;;  %v1541_v21 = vadd.f32 %v1537_v41, %v1517_v29 }
0x10b6   :  { %2619 = vtanh.f32 %v1546_v42  ;;  %v1547_v45 = vmul.f32 0.7978846, %v1543_v43 }
0x10b7   :  { %2621 = vtanh.f32 %v1544_v44  ;;  %v1545_v35 = vmul.f32 0.7978846, %v1541_v21 }
0x10b8   :  { %2623 = vtanh.f32 %v1547_v45 }
0x10b9   :  { %2625 = vtanh.f32 %v1545_v35  ;;  %v2555_v35 = vld [vmem:[%s3211_s2 + $0x18] ss:$28 sps:$4 sm:$0xff]  }
0x10ba   :  { %2412 = vmatprep.subr.bf16.mxu0 %v2555_v35 }
0x10bb   :  { %2413 = vmatpush3.bf16.msra.mxu0 %v2555_v35 }
0x10c0   :  { %v2620_v46 = vpop.eup %2619 }
0x10c1   :  { %v2622_v47 = vpop.eup %2621  ;;  %v1554_v48 = vadd.f32 1.0, %v2620_v46  ;;  %v2556_v46 = vld [vmem:[%s3211_s2 + $0x50] ss:$28 sps:$4 sm:$0xff]  }
0x10c2   :  { %v2624_v49 = vpop.eup %2623  ;;  %v1552_v27 = vadd.f32 1.0, %v2622_v47  ;;  %2414 = vmatprep.subr.bf16.mxu0 %v2556_v46  ;;  %v2557_v47 = vld [vmem:[%s3211_s2 + $0x88] ss:$28 sps:$4 sm:$0xff]  }
0x10c3   :  { %v2626_v52 = vpop.eup %2625  ;;  %v1558_v55 = vmul.f32 0.5, %v1554_v48  ;;  %v1555_v57 = vadd.f32 1.0, %v2624_v49  ;;  %2415 = vmatpush3.bf16.msra.mxu0 %v2556_v46  ;;  %v2558_v48 = vld [vmem:[%s3211_s2 + $0xc0] ss:$28 sps:$4 sm:$0xff]  }
0x10c4   :  { %v1553_v58 = vadd.f32 1.0, %v2626_v52  ;;  %v1556_v60 = vmul.f32 0.5, %v1552_v27  ;;  %2416 = vmatprep.subr.bf16.mxu0 %v2557_v47 }
0x10c5   :  { %v1559_v5 = vmul.f32 0.5, %v1555_v57  ;;  %v1562_v13 = vmul.f32 %v1558_v55, %v1522_v17 }
0x10c6   :  { %v1557_v51 = vmul.f32 0.5, %v1553_v58  ;;  %v1560_v7 = vmul.f32 %v1556_v60, %v1514_v53 }
0x10c7   :  { %v1563_v6 = vmul.f32 %v1559_v5, %v1525_v28  ;;  %2417 = vmatpush3.bf16.msra.mxu0 %v2557_v47 }
0x10c8   :  { %v1561_v9 = vmul.f32 %v1557_v51, %v1517_v29  ;;  %2418 = vmatprep.subr.bf16.mxu0 %v2558_v48 }
0x10c9   :  { %v1581_v38 = vpack.c.bf16 %v1563_v6, %v1562_v13 }
0x10ca   :  { %v1580_v10 = vpack.c.bf16 %v1561_v9, %v1560_v7 }
0x10cb   :  { %2419 = vmatpush3.bf16.msra.mxu0 %v2558_v48 }
0x10cc   :  { %2408 = vmatprep.mubr.bf16.mxu1 %v1580_v10 }
0x10cd   :  { %2409 = vmatmul.mubr.bf16.vlgmr.msra.gmra.mrb[24].mxu1 %v1581_v38  ;;  %v1684_v38 = vld [vmem:[%s3210_s4 + $0x11] ss:$0 sm:$0xff] }
0x11a0   :  { %v2410_v56 = vpop.f32.mrb[24].mxu1 }
0x11a1   :  { %v1665_v39 = vpop.f32.mrb[25].mxu1  ;;  %v1674_v4 = vadd.f32 %v2410_v56, %v1582_v11 }
0x11a2   :  { %v1666_v54 = vadd.f32 %v1665_v39, %v1582_v11  ;;  %v2411_v18 = vpop.f32.mrb[26].mxu1 }
0x11a3   :  { %v1668_v15 = vpop.f32.mrb[27].mxu1  ;;  %v1677_v19 = vadd.f32 %v2411_v18, %v1582_v11  ;;  %v1682_v28 = vadd.f32 %v1674_v4, %v3062_v8 }
0x11a4   :  { %v1669_v24 = vadd.f32 %v1668_v15, %v1582_v11  ;;  %v1680_v17 = vadd.f32 %v1666_v54, %v3055_v61  ;;  %v1685_v54 = vld [vmem:[%s3210_s4 + $0x12] ss:$0 sm:$0xff] }
0x11a5   :  { %v1683_v23 = vadd.f32 %v1677_v19, %v3064_v59  ;;  %v1692_v29 = vsel %vm251_vm13, %v1682_v28, 0.0 }
0x11a6   :  { %v1686_v53 = vsel %vm251_vm13, %v1680_v17, 0.0  ;;  %v1681_v26 = vadd.f32 %v1669_v24, %v3057_v50 }
0x11a7   :  { %1687 = vadd.xlane.f32.xlu0 %v1686_v53  ;;  %v1695_v30 = vsel %vm251_vm13, %v1683_v23, 0.0 }
0x11a8   :  { %v1689_v20 = vsel %vm251_vm13, %v1681_v26, 0.0 }
0x11a9   :  { %1690 = vadd.xlane.f32.xlu1 %v1689_v20 }
0x11ab   :  { %1693 = vadd.xlane.f32.xlu0 %v1692_v29 }
0x11ad   :  { %1696 = vadd.xlane.f32.xlu1 %v1695_v30 }
0x1234   :  { %v1688_v31 = vpop.xlane.xlu0 %1687 }
0x1235   :  { %v1698_v61 = vmul.f32 0.015625, %v1688_v31  ;;  %v1756_v31 = vld [vmem:[%s3210_s4 + $0x13] ss:$0 sm:$0xff] }
0x1236   :  { %v1691_v33 = vpop.xlane.xlu1 %1690 }
0x1237   :  { %v1702_v36 = vsub.f32 %v1680_v17, %v1698_v61  ;;  %v1699_v37 = vmul.f32 0.015625, %v1691_v33 }
0x1238   :  { %v1694_v50 = vpop.xlane.xlu0 %1693 }
0x1239   :  { %v1703_v62 = vsub.f32 %v1681_v26, %v1699_v37  ;;  %v1700_v8 = vmul.f32 0.015625, %v1694_v50  ;;  %v1706_v63 = vmul.f32 %v1702_v36, %v1702_v36 }
0x123a   :  { %v1697_v16 = vpop.xlane.xlu1 %1696 }
0x123b   :  { %v1704_v12 = vsub.f32 %v1682_v28, %v1700_v8  ;;  %v1701_v14 = vmul.f32 0.015625, %v1697_v16  ;;  %v1710_v59 = vsel %vm251_vm13, %v1706_v63, 0.0  ;;  %v1707_v40 = vmul.f32 %v1703_v62, %v1703_v62 }
0x123c   :  { %1711 = vadd.xlane.f32.xlu0 %v1710_v59 }
0x123d   :  { %v1705_v41 = vsub.f32 %v1683_v23, %v1701_v14  ;;  %v1713_v42 = vsel %vm251_vm13, %v1707_v40, 0.0  ;;  %v1708_v43 = vmul.f32 %v1704_v12, %v1704_v12 }
0x123e   :  { %1714 = vadd.xlane.f32.xlu1 %v1713_v42 }
0x123f   :  { %v1716_v44 = vsel %vm251_vm13, %v1708_v43, 0.0  ;;  %v1709_v21 = vmul.f32 %v1705_v41, %v1705_v41 }
0x1240   :  { %1717 = vadd.xlane.f32.xlu0 %v1716_v44 }
0x1241   :  { %v1719_v45 = vsel %vm251_vm13, %v1709_v21, 0.0 }
0x1242   :  { %1720 = vadd.xlane.f32.xlu1 %v1719_v45 }
0x12c9   :  { %v1712_v49 = vpop.xlane.xlu0 %1711 }
0x12ca   :  { %v1722_v27 = vmul.f32 0.015625, %v1712_v49 }
0x12cb   :  { %v1715_v52 = vpop.xlane.xlu1 %1714 }
0x12cc   :  { %v1726_v55 = vadd.f32 1e-12, %v1722_v27  ;;  %v1723_v57 = vmul.f32 0.015625, %v1715_v52 }
0x12cd   :  { %v1718_v58 = vpop.xlane.xlu0 %1717 }
0x12ce   :  { %2627 = vrsqrt.f32 %v1726_v55  ;;  %v1727_v60 = vadd.f32 1e-12, %v1723_v57  ;;  %v1724_v5 = vmul.f32 0.015625, %v1718_v58 }
0x12cf   :  { %v1721_v51 = vpop.xlane.xlu1 %1720 }
0x12d0   :  { %2629 = vrsqrt.f32 %v1727_v60  ;;  %v1728_v13 = vadd.f32 1e-12, %v1724_v5  ;;  %v1725_v6 = vmul.f32 0.015625, %v1721_v51 }
0x12d2   :  { %2631 = vrsqrt.f32 %v1728_v13  ;;  %v1729_v7 = vadd.f32 1e-12, %v1725_v6 }
0x12d4   :  { %2633 = vrsqrt.f32 %v1729_v7 }
0x12d8   :  { %v2628_v9 = vpop.eup %2627 }
0x12d9   :  { %v1734_v10 = vmul.f32 %v2628_v9, %v1702_v36 }
0x12da   :  { %v2630_v11 = vpop.eup %2629 }
0x12db   :  { %v1735_v56 = vmul.f32 %v2630_v11, %v1703_v62  ;;  %v1738_v39 = vmul.f32 %v1734_v10, %v1684_v38 }
0x12dc   :  { %v2632_v4 = vpop.eup %2631 }
0x12dd   :  { %v1736_v18 = vmul.f32 %v2632_v4, %v1704_v12  ;;  %v1739_v15 = vmul.f32 %v1735_v56, %v1684_v38  ;;  %v1742_v53 = vadd.f32 %v1738_v39, %v1685_v54 }
0x12de   :  { %v2634_v19 = vpop.eup %2633 }
0x12df   :  { %v1740_v24 = vmul.f32 %v1736_v18, %v1684_v38  ;;  %v1737_v17 = vmul.f32 %v2634_v19, %v1705_v41  ;;  %v1743_v26 = vadd.f32 %v1739_v15, %v1685_v54 }
0x12e1   :  { %v1741_v28 = vmul.f32 %v1737_v17, %v1684_v38  ;;  %v1754_v20 = vpack.c.bf16 %v1743_v26, %v1742_v53  ;;  %v1744_v23 = vadd.f32 %v1740_v24, %v1685_v54 }
0x12e3   :  { %2420 = vmatprep.mubr.msk.bf16.mxu0 %vm251_vm13, %v1754_v20  ;;  %v1745_v29 = vadd.f32 %v1741_v28, %v1685_v54 }
0x12e5   :  { %v1755_v30 = vpack.c.bf16 %v1745_v29, %v1744_v23 }
0x12e7   :  { %2421 = vmatmul.mubr.msk.bf16.vlgmr.msra.gmra.mrb[16].mxu0 %vm251_vm13, %v1755_v30 }
0x12e8   :  { %2035 = vmatprep.mubr.bf16.mxu0 %v2653_v0 }
0x13ba   :  { %v2422_v61 = vpop.f32.mrb[16].mxu0 }
0x13bb   :  { %v1830_v33 = vadd.f32 %v2422_v61, %v1756_v31  ;;  %v1821_v36 = vpop.f32.mrb[17].mxu0 }
0x13bc   :  { %v1822_v37 = vadd.f32 %v1821_v36, %v1756_v31  ;;  %v2423_v50 = vpop.f32.mrb[18].mxu0 }
0x13bd   :  { %v1833_v62 = vadd.f32 %v2423_v50, %v1756_v31  ;;  %v1824_v8 = vpop.f32.mrb[19].mxu0  ;;  %v1838_v58 = vmul.f32 %v1830_v33, %v1830_v33  ;;  %v2559_v50 = vld [vmem:[%s3211_s2 + $0x8] ss:$28 sps:$4 sm:$0xff]  }
0x13be   :  { %v1836_v63 = vmul.f32 %v1822_v37, %v1822_v37  ;;  %v1825_v16 = vadd.f32 %v1824_v8, %v1756_v31  ;;  %v2567_v8 = vld [vmem:[%s3211_s2 + $0x7c] ss:$28 sps:$4 sm:$0xff]  }
0x13bf   :  { %v1839_v60 = vmul.f32 %v1833_v62, %v1833_v62  ;;  %v1842_v5 = vmul.f32 %v1838_v58, %v1830_v33 }
0x13c0   :  { %v1840_v12 = vmul.f32 %v1836_v63, %v1822_v37  ;;  %v1837_v14 = vmul.f32 %v1825_v16, %v1825_v16  ;;  %v2565_v63 = vld [vmem:[%s3211_s2 + $0x78] ss:$28 sps:$4 sm:$0xff]  }
0x13c1   :  { %v1843_v51 = vmul.f32 %v1839_v60, %v1833_v62  ;;  %v1846_v13 = vmul.f32 0.044715, %v1842_v5 }
0x13c2   :  { %v1844_v59 = vmul.f32 0.044715, %v1840_v12  ;;  %v1841_v40 = vmul.f32 %v1837_v14, %v1825_v16  ;;  %v2570_v12 = vld [vmem:[%s3211_s2 + $0xb4] ss:$28 sps:$4 sm:$0xff]  }
0x13c3   :  { %v1847_v6 = vmul.f32 0.044715, %v1843_v51  ;;  %v1850_v7 = vadd.f32 %v1846_v13, %v1830_v33  ;;  %v1873_v13 = vld [vmem:[%s3210_s4 + $0x15] ss:$0 sm:$0xff] }
0x13c4   :  { %v1848_v41 = vadd.f32 %v1844_v59, %v1822_v37  ;;  %v1845_v42 = vmul.f32 0.044715, %v1841_v40 }
0x13c5   :  { %v1851_v9 = vadd.f32 %v1847_v6, %v1833_v62  ;;  %v1854_v38 = vmul.f32 0.7978846, %v1850_v7 }
0x13c6   :  { %v1849_v43 = vadd.f32 %v1845_v42, %v1825_v16  ;;  %v1852_v44 = vmul.f32 0.7978846, %v1848_v41 }
0x13c7   :  { %v1855_v10 = vmul.f32 0.7978846, %v1851_v9 }
0x13c8   :  { %2635 = vtanh.f32 %v1852_v44  ;;  %v1853_v21 = vmul.f32 0.7978846, %v1849_v43 }
0x13ca   :  { %2637 = vtanh.f32 %v1853_v21 }
0x13cb   :  { %2639 = vtanh.f32 %v1854_v38 }
0x13cc   :  { %2641 = vtanh.f32 %v1855_v10 }
0x13d2   :  { %v2636_v45 = vpop.eup %2635 }
0x13d3   :  { %v1860_v35 = vadd.f32 1.0, %v2636_v45 }
0x13d4   :  { %v2638_v46 = vpop.eup %2637 }
0x13d5   :  { %v1864_v47 = vmul.f32 0.5, %v1860_v35  ;;  %v1861_v48 = vadd.f32 1.0, %v2638_v46  ;;  %v2640_v11 = vpop.eup %2639 }
0x13d6   :  { %v2642_v56 = vpop.eup %2641  ;;  %v1862_v39 = vadd.f32 1.0, %v2640_v11 }
0x13d7   :  { %v1868_v49 = vmul.f32 %v1864_v47, %v1822_v37  ;;  %v1865_v27 = vmul.f32 0.5, %v1861_v48  ;;  %v1863_v18 = vadd.f32 1.0, %v2642_v56  ;;  %v2561_v37 = vld [vmem:[%s3211_s2 + $0xc] ss:$28 sps:$4 sm:$0xff]  }
0x13d8   :  { %v1866_v17 = vmul.f32 0.5, %v1862_v39  ;;  %2003 = vmatprep.subr.bf16.mxu0 %v2561_v37 }
0x13d9   :  { %v1874_v52 = vsel %vm251_vm13, %v1868_v49, 0.0  ;;  %v1869_v55 = vmul.f32 %v1865_v27, %v1825_v16  ;;  %v1867_v28 = vmul.f32 0.5, %v1863_v18  ;;  %2004 = vmatpush1.bf16.msra.mxu0 %v2559_v50  ;;  %v2568_v16 = vld [vmem:[%s3211_s2 + $0xb0] ss:$28 sps:$4 sm:$0xff]  }
0x13da   :  { %1875 = vadd.xlane.f32.xlu0 %v1874_v52  ;;  %v1870_v29 = vmul.f32 %v1866_v17, %v1830_v33  ;;  %v2564_v33 = vld [vmem:[%s3211_s2 + $0x44] ss:$28 sps:$4 sm:$0xff]  }
0x13db   :  { %v1877_v57 = vsel %vm251_vm13, %v1869_v55, 0.0  ;;  %v1871_v31 = vmul.f32 %v1867_v28, %v1833_v62  ;;  %v2562_v62 = vld [vmem:[%s3211_s2 + $0x40] ss:$28 sps:$4 sm:$0xff]   ;;  %2005 = vmatprep.subr.bf16.mxu0 %v2564_v33 }
0x13dc   :  { %1878 = vadd.xlane.f32.xlu1 %v1877_v57  ;;  %v1880_v61 = vsel %vm251_vm13, %v1870_v29, 0.0  ;;  %v1872_v57 = vld [vmem:[%s3210_s4 + $0x14] ss:$0 sm:$0xff] }
0x13dd   :  { %v1883_v36 = vsel %vm251_vm13, %v1871_v31, 0.0  ;;  %2006 = vmatpush1.bf16.msra.mxu0 %v2562_v62 }
0x13de   :  { %2007 = vmatprep.subr.bf16.mxu0 %v2567_v8 }
0x13e1   :  { %2008 = vmatpush1.bf16.msra.mxu0 %v2565_v63 }
0x13e2   :  { %2009 = vmatprep.subr.bf16.mxu0 %v2570_v12 }
0x13e5   :  { %2010 = vmatpush1.bf16.msra.mxu0 %v2568_v16 }
0x1467   :  { %v1876_v4 = vpop.xlane.xlu0 %1875 }
0x1468   :  { %v1886_v54 = vmul.f32 0.015625, %v1876_v4 }
0x1469   :  { %v1879_v15 = vpop.xlane.xlu1 %1878 }
0x146a   :  { %v1890_v19 = vsub.f32 %v1868_v49, %v1886_v54  ;;  %v1887_v24 = vmul.f32 0.015625, %v1879_v15 }
0x146c   :  { %v1891_v53 = vsub.f32 %v1869_v55, %v1887_v24  ;;  %v1894_v26 = vmul.f32 %v1890_v19, %v1890_v19 }
0x146e   :  { %v1898_v20 = vsel %vm251_vm13, %v1894_v26, 0.0  ;;  %v1895_v23 = vmul.f32 %v1891_v53, %v1891_v53 }
0x146f   :  { %1899 = vadd.xlane.f32.xlu0 %v1898_v20 }
0x1470   :  { %v1901_v30 = vsel %vm251_vm13, %v1895_v23, 0.0  ;;  %v2213_v23 = vld [vmem:[%s3210_s4 + $0x17] ss:$8 sm:$0x3] }
0x1471   :  { %1902 = vadd.xlane.f32.xlu1 %v1901_v30  ;;  %v1954_v30 = vrot.slane %v2213_v23, %v959_v1 }
0x1473   :  { %1881 = vadd.xlane.f32.xlu0 %v1880_v61 }
0x1475   :  { %1884 = vadd.xlane.f32.xlu1 %v1883_v36 }
0x14fc   :  { %v1900_v14 = vpop.xlane.xlu0 %1899 }
0x14fd   :  { %v1910_v59 = vmul.f32 0.015625, %v1900_v14 }
0x14fe   :  { %v1903_v40 = vpop.xlane.xlu1 %1902 }
0x14ff   :  { %v1914_v41 = vadd.f32 1e-12, %v1910_v59  ;;  %v1911_v42 = vmul.f32 0.015625, %v1903_v40 }
0x1500   :  { %v1882_v43 = vpop.xlane.xlu0 %1881 }
0x1501   :  { %2643 = vrsqrt.f32 %v1914_v41  ;;  %v1915_v44 = vadd.f32 1e-12, %v1911_v42  ;;  %v1888_v21 = vmul.f32 0.015625, %v1882_v43 }
0x1502   :  { %v1885_v45 = vpop.xlane.xlu1 %1884 }
0x1503   :  { %2645 = vrsqrt.f32 %v1915_v44  ;;  %v1892_v35 = vsub.f32 %v1870_v29, %v1888_v21  ;;  %v1889_v46 = vmul.f32 0.015625, %v1885_v45  ;;  %v1950_v29 = vrot.slane %v2213_v23, %v540_v34 }
0x1505   :  { %v1893_v47 = vsub.f32 %v1871_v31, %v1889_v46  ;;  %v1896_v48 = vmul.f32 %v1892_v35, %v1892_v35 }
0x1507   :  { %v1904_v49 = vsel %vm251_vm13, %v1896_v48, 0.0  ;;  %v1897_v27 = vmul.f32 %v1893_v47, %v1893_v47 }
0x1508   :  { %1905 = vadd.xlane.f32.xlu0 %v1904_v49 }
0x1509   :  { %v1907_v52 = vsel %vm251_vm13, %v1897_v27, 0.0 }
0x150a   :  { %1908 = vadd.xlane.f32.xlu1 %v1907_v52 }
0x150b   :  { %v2644_v55 = vpop.eup %2643 }
0x150c   :  { %v1922_v58 = vmul.f32 %v2644_v55, %v1890_v19 }
0x150d   :  { %v2646_v60 = vpop.eup %2645 }
0x150e   :  { %v1926_v5 = vmul.f32 %v1922_v58, %v1872_v57  ;;  %v1923_v51 = vmul.f32 %v2646_v60, %v1891_v53  ;;  %v2651_v58 = vld [vmem:[%s3207_s0] sm:$0xff]  ;;  %v2652_v60 = vld [vmem:[%s3207_s0 + $0x8] sm:$0xff] }
0x150f   :  { %vm2098_vm10 = vcmp.eq.s32.totalorder %v2651_v58, 103  ;;  %vm2099_vm12 = vcmp.eq.s32.totalorder %v2652_v60, 103 }
0x1510   :  { %v1927_v6 = vmul.f32 %v1923_v51, %v1872_v57  ;;  %v1930_v7 = vadd.f32 %v1926_v5, %v1873_v13  ;;  %v2102_v5 = vsel %vm2098_vm10, 1, %v2653_v0  ;;  %v2104_v51 = vsel %vm2100_vm11, 1, %v2653_v0 }
0x1512   :  { %v1931_v9 = vadd.f32 %v1927_v6, %v1873_v13 }
0x1514   :  { %v1942_v38 = vpack.c.bf16 %v1931_v9, %v1930_v7  ;;  %v2106_v9 = vadd.s32 %v2104_v51, %v2102_v5 }
0x1516   :  { %2222 = vmatmul.mubr.msk.bf16.vlgmr.msra.gmra.mrb[20].mxu0 %vm251_vm13, %v1942_v38  ;;  %vm2108_vm14 = vcmp.gt.s32.totalorder %v2106_v9, 0 }
0x1517   :  { %2045 = vmatprep.mubr.bf16.mxu0 %v2653_v0 }
0x1595   :  { %v1906_v10 = vpop.xlane.xlu0 %1905 }
0x1596   :  { %v1912_v11 = vmul.f32 0.015625, %v1906_v10 }
0x1597   :  { %v1909_v56 = vpop.xlane.xlu1 %1908 }
0x1598   :  { %v1916_v39 = vadd.f32 1e-12, %v1912_v11  ;;  %v1913_v4 = vmul.f32 0.015625, %v1909_v56 }
0x159a   :  { %2647 = vrsqrt.f32 %v1916_v39  ;;  %v1917_v54 = vadd.f32 1e-12, %v1913_v4 }
0x159c   :  { %2649 = vrsqrt.f32 %v1917_v54 }
0x15a4   :  { %v2648_v18 = vpop.eup %2647 }
0x15a5   :  { %v1924_v15 = vmul.f32 %v2648_v18, %v1892_v35 }
0x15a6   :  { %v2650_v19 = vpop.eup %2649 }
0x15a7   :  { %v1925_v24 = vmul.f32 %v2650_v19, %v1893_v47  ;;  %v1928_v17 = vmul.f32 %v1924_v15, %v1872_v57 }
0x15a9   :  { %v1929_v53 = vmul.f32 %v1925_v24, %v1872_v57  ;;  %v1932_v26 = vadd.f32 %v1928_v17, %v1873_v13 }
0x15ab   :  { %v1933_v28 = vadd.f32 %v1929_v53, %v1873_v13  ;;  %v2103_v13 = vsel %vm2099_vm12, 1, %v2653_v0 }
0x15ad   :  { %v1943_v20 = vpack.c.bf16 %v1933_v28, %v1932_v26 }
0x15af   :  { %2223 = vmatmul.mubr.msk.bf16.gmra.mrb[24].mxu0 %vm251_vm13, %v1943_v20  ;;  %vm2101_vm13 = vcmp.eq.s32.totalorder %v2707_v3, 103 }
0x15b0   :  { %v2105_v6 = vsel %vm2101_vm13, 1, %v2653_v0 }
0x15b1   :  { %v2107_v10 = vadd.s32 %v2105_v6, %v2103_v13 }
0x15b3   :  { %vm2109_vm15 = vcmp.gt.s32.totalorder %v2107_v10, 0 }
0x15e9   :  { %v2037_v31 = vpop.f32.mrb[20].mxu0 }
0x15ea   :  { %v2038_v61 = vadd.f32 %v2037_v31, %v1950_v29  ;;  %v2039_v36 = vpop.f32.mrb[21].mxu0 }
0x15eb   :  { %v2040_v37 = vadd.f32 %v2039_v36, %v1954_v30  ;;  %v2041_v50 = vpop.f32.mrb[22].mxu0 }
0x15ec   :  { %v2042_v33 = vadd.f32 %v2041_v50, %v1950_v29  ;;  %v2043_v62 = vpop.f32.mrb[23].mxu0 }
0x15ed   :  { %v2044_v8 = vadd.f32 %v2043_v62, %v1954_v30  ;;  %v2052_v63 = vmax.f32 %v2038_v61, %v2040_v37 }
0x15ef   :  { %2053 = vmax.xlane.f32.xlu0 %v2052_v63  ;;  %v2055_v16 = vmax.f32 %v2042_v33, %v2044_v8 }
0x15f1   :  { %2056 = vmax.xlane.f32.xlu1 %v2055_v16 }
0x167c   :  { %v2054_v12 = vpop.xlane.xlu0 %2053 }
0x167d   :  { %vm2058_vm2 = vcmp.eq.f32.partialorder %v2038_v61, %v2054_v12  ;;  %vm2059_vm3 = vcmp.eq.f32.partialorder %v2040_v37, %v2054_v12 }
0x167e   :  { %v2062_v34 = vsel %vm2058_vm2, %v2768_v22, 256  ;;  %v2063_v32 = vsel %vm2059_vm3, %v2771_v25, 256  ;;  %v2057_v1 = vpop.xlane.xlu1 %2056 }
0x167f   :  { %vm2066_vm4 = vcmp.lt.s32.totalorder %v2062_v34, %v2063_v32  ;;  %vm2060_vm5 = vcmp.eq.f32.partialorder %v2042_v33, %v2057_v1  ;;  %vm2061_vm6 = vcmp.eq.f32.partialorder %v2044_v8, %v2057_v1 }
0x1680   :  { %v2064_v14 = vsel %vm2060_vm5, %v2768_v22, 256  ;;  %v2065_v59 = vsel %vm2061_vm6, %v2771_v25, 256  ;;  %v2067_v40 = vsel %vm2066_vm4, %v2062_v34, %v2063_v32 }
0x1681   :  { %vm2082_vm7 = vcmp.lt.s32.totalorder %v2064_v14, %v2065_v59  ;;  %v2069_v41 = vshra.s32 %v2067_v40, 16  ;;  %v2068_v48 = vand.u32 65535, %v2067_v40 }
0x1682   :  { %v2047_v42 = vpop.f32.mrb[24].mxu0  ;;  %v2083_v43 = vsel %vm2082_vm7, %v2064_v14, %v2065_v59 }
0x1683   :  { %v2048_v44 = vpop.f32.mrb[25].mxu0  ;;  %v2071_v21 = vcvt.s32.f32 %v2069_v41  ;;  %v2085_v45 = vshra.s32 %v2083_v43, 16  ;;  %v2084_v49 = vand.u32 65535, %v2083_v43  ;;  %v2070_v52 = vcvt.s32.f32 %v2068_v48 }
0x1684   :  { %v2049_v35 = vpop.f32.mrb[26].mxu0 }
0x1685   :  { %v2050_v46 = vpop.f32.mrb[27].mxu0  ;;  %2072 = vmin.xlane.f32.xlu0 %v2071_v21  ;;  %v2087_v47 = vcvt.s32.f32 %v2085_v45  ;;  %v2086_v55 = vcvt.s32.f32 %v2084_v49 }
0x1687   :  { %2088 = vmin.xlane.f32.xlu1 %v2087_v47 }
0x1712   :  { %v2073_v27 = vpop.xlane.xlu0 %2072 }
0x1713   :  { %vm2074_vm8 = vcmp.eq.f32.partialorder %v2071_v21, %v2073_v27  ;;  %v2079_v7 = vcvt.f32.s32 %v2073_v27 }
0x1714   :  { %v2089_v22 = vpop.xlane.xlu1 %2088  ;;  %v2075_v25 = vsel %vm2074_vm8, %v2070_v52, inf }
0x1715   :  { %2076 = vmin.xlane.f32.xlu0 %v2075_v25  ;;  %vm2090_vm9 = vcmp.eq.f32.partialorder %v2087_v47, %v2089_v22  ;;  %v2095_v38 = vcvt.f32.s32 %v2089_v22  ;;  %v2080_v11 = vshll.u32 %v2079_v7, 16 }
0x1716   :  { %v2091_v57 = vsel %vm2090_vm9, %v2086_v55, inf }
0x1717   :  { %2092 = vmin.xlane.f32.xlu1 %v2091_v57  ;;  %v2096_v4 = vshll.u32 %v2095_v38, 16 }
0x17a2   :  { %v2077_v2 = vpop.xlane.xlu0 %2076 }
0x17a3   :  { %v2078_v56 = vcvt.f32.s32 %v2077_v2 }
0x17a4   :  { %v2093_v39 = vpop.xlane.xlu1 %2092 }
0x17a5   :  { %v2081_v54 = vadd.s32 %v2080_v11, %v2078_v56  ;;  %v2094_v3 = vcvt.f32.s32 %v2093_v39 }
0x17a7   :  { %v2110_v18 = vsel %vm2108_vm14, %v2081_v54, %v2651_v58  ;;  %v2097_v15 = vadd.s32 %v2096_v4, %v2094_v3 }
0x17a8   :  { %2113 = vst.msk [vmem:[%s3208_s5] sm:$0xff] %vm2112_vm0, %v2110_v18 }
0x17a9   :  { %v2111_v0 = vsel %vm2109_vm15, %v2097_v15, %v2652_v60 }
0x17aa   :  { %2114 = vst.msk [vmem:[%s3208_s5 + $0x8] sm:$0xff] %vm2112_vm0, %v2111_v0 }

</bundles_post_ra>
